<compile_context>
chip_gen: v6e
topology: v6e:2x2x1
jax: 0.10.0
libtpu: 0.0.40
codegen_flags: <defaults>
</compile_context>

<pallas_src>
import functools

import jax
import jax.numpy as jnp
from jax.experimental import pallas as pl
from jax.experimental.pallas import tpu as pltpu

IP = 784   # input features (28*28 MNIST)
HID = 50   # hidden units
NC = 10    # number of classes

TB_MAX = 2048  # max batch-tile rows (VMEM-safe on v5e/v6e/v7x with defaults)


def mlp_kernel(x_ref, w1_ref, b1_ref, w2_ref, b2_ref, o_ref):
    # x_ref:  (TB, IP)   VMEM   (f32 or bf16)
    # w1_ref: (IP, HID)  VMEM   (transposed fc1.weight; f32 or bf16)
    # b1_ref: (1, HID)   VMEM   f32
    # w2_ref: (HID, NC)  VMEM   (transposed fc2.weight) f32
    # b2_ref: (1, NC)    VMEM   f32
    # o_ref:  (TB, NC)   VMEM   f32
    x = x_ref[...]

    # fc1 + ReLU: MXU matmul with f32 accumulation, VPU bias+ReLU.
    h = jnp.dot(x, w1_ref[...], preferred_element_type=jnp.float32)
    h = jnp.maximum(h + b1_ref[...], 0.0)

    # fc2
    y = jnp.dot(h, w2_ref[...], preferred_element_type=jnp.float32)
    y = y + b2_ref[...]

    o_ref[...] = y.astype(o_ref.dtype)


def prepare_params(w1, b1, w2, b2, use_bf16=False):
    """One-time parameter prep: pre-transpose to (in, out) row-major layout.

    Done once outside the per-call path so no per-forward transpose op.
    """
    in_dtype = jnp.bfloat16 if use_bf16 else jnp.float32
    w1_t = w1.T.astype(in_dtype)           # (IP, HID)
    b1_r = b1.reshape(1, HID).astype(jnp.float32)
    w2_t = w2.T.astype(jnp.float32)        # (HID, NC)
    b2_r = b2.reshape(1, NC).astype(jnp.float32)
    return w1_t, b1_r, w2_t, b2_r


def _round_up(n, m):
    return (n + m - 1) // m * m


@functools.partial(jax.jit, static_argnames=("use_bf16",))
def nn_forward(x, w1_t, b1_r, w2_t, b2_r, use_bf16=False):
    """x: (B, IP) f32; params as returned by prepare_params. Returns (B, NC) f32."""
    B = x.shape[0]

    # Batch tile: multiple of 256 rows, capped for VMEM; pad B up to a multiple.
    TB = min(TB_MAX, _round_up(B, 256))
    Bp = _round_up(B, TB)

    if use_bf16:
        x = x.astype(jnp.bfloat16)
    if Bp != B:
        x = jnp.pad(x, ((0, Bp - B), (0, 0)))  # zero rows; sliced off below

    out = pl.pallas_call(
        mlp_kernel,
        out_shape=jax.ShapeDtypeStruct((Bp, NC), jnp.float32),
        grid_spec=pl.GridSpec(
            grid=(Bp // TB,),
            in_specs=[
                # x: streamed per batch tile (double-buffered by the pipeline)
                pl.BlockSpec((TB, IP), lambda i: (i, 0)),
                # weights / biases: constant block index -> VMEM-resident
                pl.BlockSpec((IP, HID), lambda i: (0, 0)),
                pl.BlockSpec((1, HID), lambda i: (0, 0)),
                pl.BlockSpec((HID, NC), lambda i: (0, 0)),
                pl.BlockSpec((1, NC), lambda i: (0, 0)),
            ],
            out_specs=pl.BlockSpec((TB, NC), lambda i: (i, 0)),
        ),
        compiler_params=pltpu.CompilerParams(
            # Independent batch tiles: shardable across both TCs on v7x.
            dimension_semantics=("parallel",)),
    )(x, w1_t, b1_r, w2_t, b2_r)

    return out[:B]


def reference_forward(x, w1, b1, w2, b2):
    h = jnp.maximum(x @ w1.T + b1, 0.0)
    return h @ w2.T + b2


if __name__ == "__main__":
    key = jax.random.PRNGKey(0)
    kx, kw1, kb1, kw2, kb2 = jax.random.split(key, 5)

    # Deterministic param init mimicking nn.Linear's uniform(-1/sqrt(fan_in), ...)
    bound1 = 1.0 / (IP ** 0.5)
    w1 = jax.random.uniform(kw1, (HID, IP), jnp.float32, -bound1, bound1)
    b1 = jax.random.uniform(kb1, (HID,), jnp.float32, -bound1, bound1)
    bound2 = 1.0 / (HID ** 0.5)
    w2 = jax.random.uniform(kw2, (NC, HID), jnp.float32, -bound2, bound2)
    b2 = jax.random.uniform(kb2, (NC,), jnp.float32, -bound2, bound2)

    # Params prepared once (pre-transposed), reused across forward calls.
    params = prepare_params(w1, b1, w2, b2, use_bf16=False)

    ok = True
    for B in (8, 37):  # 37 exercises the ragged-batch pad/slice path
        x = jax.random.normal(kx, (B, IP), dtype=jnp.float32)
        out = nn_forward(x, *params)
        out = jax.block_until_ready(out)
        ref = reference_forward(x, w1, b1, w2, b2)
        assert out.shape == (B, NC)
        ok &= bool(jnp.allclose(out, ref, atol=1e-4, rtol=1e-4))

    assert ok, "mismatch vs reference"
    print("KERNEL_OK")
</pallas_src>

<mosaic_0001>
module attributes {stable_mosaic.version = 11 : i64} {
  func.func @mlp_kernel(%arg0: i32, %arg1: memref<256x784xf32, #tpu.memory_space<vmem>>, %arg2: memref<784x50xf32, #tpu.memory_space<vmem>>, %arg3: memref<1x50xf32, #tpu.memory_space<vmem>>, %arg4: memref<50x10xf32, #tpu.memory_space<vmem>>, %arg5: memref<1x10xf32, #tpu.memory_space<vmem>>, %arg6: memref<256x10xf32, #tpu.memory_space<vmem>>) attributes {dimension_semantics = [#tpu.dimension_semantics<parallel>], iteration_bounds = array<i64: 1>, scalar_prefetch = 0 : i64, scratch_operands = 0 : i64, tpu.core_type = #tpu.core_type<tc>, window_params = [{transform_indices = @transform_0, window_bounds = array<i64: 256, 784>}, {pipeline_mode = #tpu.pipeline_mode<synchronous>, transform_indices = @transform_1, window_bounds = array<i64: 784, 50>}, {pipeline_mode = #tpu.pipeline_mode<synchronous>, transform_indices = @transform_2, window_bounds = array<i64: 1, 50>}, {pipeline_mode = #tpu.pipeline_mode<synchronous>, transform_indices = @transform_3, window_bounds = array<i64: 50, 10>}, {pipeline_mode = #tpu.pipeline_mode<synchronous>, transform_indices = @transform_4, window_bounds = array<i64: 1, 10>}, {transform_indices = @transform_5, window_bounds = array<i64: 256, 10>}]} {
    %c0 = arith.constant 0 : index
    %c0_0 = arith.constant 0 : index
    %0 = vector.load %arg1[%c0, %c0_0] : memref<256x784xf32, #tpu.memory_space<vmem>>, vector<256x784xf32>
    %c0_1 = arith.constant 0 : index
    %c0_2 = arith.constant 0 : index
    %1 = vector.load %arg2[%c0_1, %c0_2] : memref<784x50xf32, #tpu.memory_space<vmem>>, vector<784x50xf32>
    %cst = arith.constant dense<0.000000e+00> : vector<256x50xf32>
    %2 = tpu.matmul %0, %1, %cst {dimension_numbers = #tpu.dot_dimension_numbers<[1], [0], [0], [1], [0, 0, 1, 1], [], []>} : vector<256x784xf32>, vector<784x50xf32>, vector<256x50xf32> -> vector<256x50xf32>
    %c0_3 = arith.constant 0 : index
    %c0_4 = arith.constant 0 : index
    %3 = vector.load %arg3[%c0_3, %c0_4] : memref<1x50xf32, #tpu.memory_space<vmem>>, vector<1x50xf32>
    %4 = vector.broadcast %3 : vector<1x50xf32> to vector<256x50xf32>
    %5 = arith.addf %2, %4 : vector<256x50xf32>
    %cst_5 = arith.constant 0.000000e+00 : f32
    %6 = vector.broadcast %cst_5 : f32 to vector<256x50xf32>
    %7 = arith.maximumf %5, %6 : vector<256x50xf32>
    %c0_6 = arith.constant 0 : index
    %c0_7 = arith.constant 0 : index
    %8 = vector.load %arg4[%c0_6, %c0_7] : memref<50x10xf32, #tpu.memory_space<vmem>>, vector<50x10xf32>
    %cst_8 = arith.constant dense<0.000000e+00> : vector<256x10xf32>
    %9 = tpu.matmul %7, %8, %cst_8 {dimension_numbers = #tpu.dot_dimension_numbers<[1], [0], [0], [1], [0, 0, 1, 1], [], []>} : vector<256x50xf32>, vector<50x10xf32>, vector<256x10xf32> -> vector<256x10xf32>
    %c0_9 = arith.constant 0 : index
    %c0_10 = arith.constant 0 : index
    %10 = vector.load %arg5[%c0_9, %c0_10] : memref<1x10xf32, #tpu.memory_space<vmem>>, vector<1x10xf32>
    %11 = vector.broadcast %10 : vector<1x10xf32> to vector<256x10xf32>
    %12 = arith.addf %9, %11 : vector<256x10xf32>
    %c0_11 = arith.constant 0 : index
    %c0_12 = arith.constant 0 : index
    %13 = vector.load %arg6[%c0_11, %c0_12] : memref<256x10xf32, #tpu.memory_space<vmem>>, vector<256x10xf32>
    tpu.vector_store %arg6[%c0_11, %c0_12], %12 {strides = array<i32>} : memref<256x10xf32, #tpu.memory_space<vmem>>, vector<256x10xf32>,
    return
  }
  func.func @transform_0(%arg0: i32) -> (i32, i32) {
    %c0_i32 = arith.constant 0 : i32
    %c0_i32_0 = arith.constant 0 : i32
    return %arg0, %c0_i32 : i32, i32
  }
  func.func @transform_1(%arg0: i32) -> (i32, i32) {
    %c0_i32 = arith.constant 0 : i32
    %c0_i32_0 = arith.constant 0 : i32
    %c0_i32_1 = arith.constant 0 : i32
    return %c0_i32, %c0_i32_0 : i32, i32
  }
  func.func @transform_2(%arg0: i32) -> (i32, i32) {
    %c0_i32 = arith.constant 0 : i32
    %c0_i32_0 = arith.constant 0 : i32
    %c0_i32_1 = arith.constant 0 : i32
    return %c0_i32, %c0_i32_0 : i32, i32
  }
  func.func @transform_3(%arg0: i32) -> (i32, i32) {
    %c0_i32 = arith.constant 0 : i32
    %c0_i32_0 = arith.constant 0 : i32
    %c0_i32_1 = arith.constant 0 : i32
    return %c0_i32, %c0_i32_0 : i32, i32
  }
  func.func @transform_4(%arg0: i32) -> (i32, i32) {
    %c0_i32 = arith.constant 0 : i32
    %c0_i32_0 = arith.constant 0 : i32
    %c0_i32_1 = arith.constant 0 : i32
    return %c0_i32, %c0_i32_0 : i32, i32
  }
  func.func @transform_5(%arg0: i32) -> (i32, i32) {
    %c0_i32 = arith.constant 0 : i32
    %c0_i32_0 = arith.constant 0 : i32
    return %arg0, %c0_i32 : i32, i32
  }
}

</mosaic_0001>

<bundles_post_ra>
// kernel: nn_forward.1
= control target key start
LH: loop header
LB: loop body
LE: loop exit
PB: predicated region body
PF: predicated region fallthrough
CT: control target
= control target key end

     0   :  { %v2010_v0 = vmov 0.0   ;;  %vm349_vm0 = vcmask 130048   ;;  %vm1489_vm1 = vcmask 1041408   ;;  %vm1392_vm2 = vcmask 408576   ;;  %s3486_s1 = inlined_call_operand.vmem [shape: f32[784,50], index: 1, kind: input, shape index: {}]   ;;  %s3487_s0 = inlined_call_operand.vmem [shape: f32[256,784], index: 0, kind: input, shape index: {}]   ;;  %s3488_s2 = inlined_call_operand.vmem [shape: f32[1,50], index: 2, kind: input, shape index: {}]   ;;  %s3489_s3 = inlined_call_operand.vmem [shape: f32[50,10], index: 3, kind: input, shape index: {}]   ;;  %s3490_s4 = inlined_call_operand.vmem [shape: f32[1,10], index: 4, kind: input, shape index: {}]   ;;  %s3491_s5 = inlined_call_operand.vmem [shape: f32[256,10], index: 5, kind: output, shape index: {}]  }
   0x1   :  { %446 = vmatprep.subr.mxu0 %v2010_v0  ;;  %671 = vmatprep.subr.mxu1 %v2010_v0  ;;  %v259_v1 = vld [vmem:[%s3486_s1 + $0x78] sm:$0xff]  ;;  %v258_v3 = vld [vmem:[%s3486_s1 + $0x70] sm:$0xff]  ;;  %v257_v5 = vld [vmem:[%s3486_s1 + $0x68] sm:$0xff]  ;;  %vm1718_vm3 = vcmask 80896  }
   0x2   :  { %v291_v2 = vld [vmem:[%s3486_s1 + $0x178] sm:$0xff]  ;;  %447 = vmatpush1.msra.mxu0 %v259_v1  ;;  %v290_v4 = vld [vmem:[%s3486_s1 + $0x170] sm:$0xff]  ;;  %v289_v6 = vld [vmem:[%s3486_s1 + $0x168] sm:$0xff] }
   0x3   :  { %672 = vmatpush1.msra.mxu1 %v291_v2  ;;  %448 = vmatprep.subr.mxu0 %v2010_v0  ;;  %v256_v7 = vld [vmem:[%s3486_s1 + $0x60] sm:$0xff]  ;;  %v255_v9 = vld [vmem:[%s3486_s1 + $0x58] sm:$0xff]  ;;  %v254_v11 = vld [vmem:[%s3486_s1 + $0x50] sm:$0xff] }
   0x4   :  { %673 = vmatprep.subr.mxu1 %v2010_v0  ;;  %449 = vmatpush1.msra.mxu0 %v258_v3  ;;  %v288_v8 = vld [vmem:[%s3486_s1 + $0x160] sm:$0xff]  ;;  %v287_v10 = vld [vmem:[%s3486_s1 + $0x158] sm:$0xff]  ;;  %v286_v12 = vld [vmem:[%s3486_s1 + $0x150] sm:$0xff] }
   0x5   :  { %674 = vmatpush1.msra.mxu1 %v290_v4  ;;  %450 = vmatprep.subr.mxu0 %v2010_v0  ;;  %v253_v13 = vld [vmem:[%s3486_s1 + $0x48] sm:$0xff]  ;;  %v252_v15 = vld [vmem:[%s3486_s1 + $0x40] sm:$0xff]  ;;  %v251_v17 = vld [vmem:[%s3486_s1 + $0x38] sm:$0xff] }
   0x6   :  { %675 = vmatprep.subr.mxu1 %v2010_v0  ;;  %451 = vmatpush1.msra.mxu0 %v257_v5  ;;  %v285_v14 = vld [vmem:[%s3486_s1 + $0x148] sm:$0xff]  ;;  %v284_v16 = vld [vmem:[%s3486_s1 + $0x140] sm:$0xff]  ;;  %v283_v18 = vld [vmem:[%s3486_s1 + $0x138] sm:$0xff] }
   0x7   :  { %676 = vmatpush1.msra.mxu1 %v289_v6  ;;  %452 = vmatprep.subr.mxu0 %v2010_v0  ;;  %v250_v19 = vld [vmem:[%s3486_s1 + $0x30] sm:$0xff]  ;;  %v249_v21 = vld [vmem:[%s3486_s1 + $0x28] sm:$0xff]  ;;  %v248_v23 = vld [vmem:[%s3486_s1 + $0x20] sm:$0xff] }
   0x8   :  { %677 = vmatprep.subr.mxu1 %v2010_v0  ;;  %453 = vmatpush1.msra.mxu0 %v256_v7  ;;  %v282_v20 = vld [vmem:[%s3486_s1 + $0x130] sm:$0xff]  ;;  %v281_v22 = vld [vmem:[%s3486_s1 + $0x128] sm:$0xff]  ;;  %v280_v24 = vld [vmem:[%s3486_s1 + $0x120] sm:$0xff] }
   0x9   :  { %678 = vmatpush1.msra.mxu1 %v288_v8  ;;  %454 = vmatprep.subr.mxu0 %v2010_v0  ;;  %v247_v25 = vld [vmem:[%s3486_s1 + $0x18] sm:$0xff]  ;;  %v246_v27 = vld [vmem:[%s3486_s1 + $0x10] sm:$0xff]  ;;  %v245_v29 = vld [vmem:[%s3486_s1 + $0x8] sm:$0xff] }
   0xa   :  { %679 = vmatprep.subr.mxu1 %v2010_v0  ;;  %455 = vmatpush1.msra.mxu0 %v255_v9  ;;  %v279_v26 = vld [vmem:[%s3486_s1 + $0x118] sm:$0xff]  ;;  %v278_v28 = vld [vmem:[%s3486_s1 + $0x110] sm:$0xff]  ;;  %v277_v30 = vld [vmem:[%s3486_s1 + $0x108] sm:$0xff] }
   0xb   :  { %680 = vmatpush1.msra.mxu1 %v287_v10  ;;  %456 = vmatprep.subr.mxu0 %v2010_v0  ;;  %v244_v31 = vld [vmem:[%s3486_s1] sm:$0xff]  ;;  %v275_v33 = vld [vmem:[%s3486_s1 + $0xf8] sm:$0xff]  ;;  %v274_v35 = vld [vmem:[%s3486_s1 + $0xf0] sm:$0xff] }
   0xc   :  { %681 = vmatprep.subr.mxu1 %v2010_v0  ;;  %457 = vmatpush1.msra.mxu0 %v254_v11  ;;  %v276_v32 = vld [vmem:[%s3486_s1 + $0x100] sm:$0xff]  ;;  %v307_v34 = vld [vmem:[%s3486_s1 + $0x1f8] sm:$0xff]  ;;  %v306_v36 = vld [vmem:[%s3486_s1 + $0x1f0] sm:$0xff] }
   0xd   :  { %682 = vmatpush1.msra.mxu1 %v286_v12  ;;  %458 = vmatprep.subr.mxu0 %v2010_v0  ;;  %v273_v37 = vld [vmem:[%s3486_s1 + $0xe8] sm:$0xff]  ;;  %v272_v39 = vld [vmem:[%s3486_s1 + $0xe0] sm:$0xff]  ;;  %v271_v41 = vld [vmem:[%s3486_s1 + $0xd8] sm:$0xff] }
   0xe   :  { %683 = vmatprep.subr.mxu1 %v2010_v0  ;;  %459 = vmatpush1.msra.mxu0 %v253_v13  ;;  %v305_v38 = vld [vmem:[%s3486_s1 + $0x1e8] sm:$0xff]  ;;  %v304_v40 = vld [vmem:[%s3486_s1 + $0x1e0] sm:$0xff]  ;;  %v303_v42 = vld [vmem:[%s3486_s1 + $0x1d8] sm:$0xff] }
   0xf   :  { %684 = vmatpush1.msra.mxu1 %v285_v14  ;;  %460 = vmatprep.subr.mxu0 %v2010_v0  ;;  %v270_v43 = vld [vmem:[%s3486_s1 + $0xd0] sm:$0xff]  ;;  %v269_v45 = vld [vmem:[%s3486_s1 + $0xc8] sm:$0xff]  ;;  %v268_v47 = vld [vmem:[%s3486_s1 + $0xc0] sm:$0xff] }
  0x10   :  { %685 = vmatprep.subr.mxu1 %v2010_v0  ;;  %461 = vmatpush1.msra.mxu0 %v252_v15  ;;  %v302_v44 = vld [vmem:[%s3486_s1 + $0x1d0] sm:$0xff]  ;;  %v301_v46 = vld [vmem:[%s3486_s1 + $0x1c8] sm:$0xff]  ;;  %v300_v48 = vld [vmem:[%s3486_s1 + $0x1c0] sm:$0xff] }
  0x11   :  { %686 = vmatpush1.msra.mxu1 %v284_v16  ;;  %462 = vmatprep.subr.mxu0 %v2010_v0  ;;  %v267_v49 = vld [vmem:[%s3486_s1 + $0xb8] sm:$0xff]  ;;  %v266_v51 = vld [vmem:[%s3486_s1 + $0xb0] sm:$0xff]  ;;  %v265_v53 = vld [vmem:[%s3486_s1 + $0xa8] sm:$0xff] }
  0x12   :  { %687 = vmatprep.subr.mxu1 %v2010_v0  ;;  %463 = vmatpush1.msra.mxu0 %v251_v17  ;;  %v299_v50 = vld [vmem:[%s3486_s1 + $0x1b8] sm:$0xff]  ;;  %v298_v52 = vld [vmem:[%s3486_s1 + $0x1b0] sm:$0xff]  ;;  %v297_v54 = vld [vmem:[%s3486_s1 + $0x1a8] sm:$0xff] }
  0x13   :  { %688 = vmatpush1.msra.mxu1 %v283_v18  ;;  %464 = vmatprep.subr.mxu0 %v2010_v0  ;;  %v264_v55 = vld [vmem:[%s3486_s1 + $0xa0] sm:$0xff]  ;;  %v263_v57 = vld [vmem:[%s3486_s1 + $0x98] sm:$0xff]  ;;  %v262_v59 = vld [vmem:[%s3486_s1 + $0x90] sm:$0xff] }
  0x14   :  { %689 = vmatprep.subr.mxu1 %v2010_v0  ;;  %465 = vmatpush1.msra.mxu0 %v250_v19  ;;  %v296_v56 = vld [vmem:[%s3486_s1 + $0x1a0] sm:$0xff]  ;;  %v295_v58 = vld [vmem:[%s3486_s1 + $0x198] sm:$0xff]  ;;  %v294_v60 = vld [vmem:[%s3486_s1 + $0x190] sm:$0xff] }
  0x15   :  { %690 = vmatpush1.msra.mxu1 %v282_v20  ;;  %466 = vmatprep.subr.mxu0 %v2010_v0  ;;  %v261_v61 = vld [vmem:[%s3486_s1 + $0x88] sm:$0xff]  ;;  %v260_v63 = vld [vmem:[%s3486_s1 + $0x80] sm:$0xff]  ;;  %v23_v3 = vld [vmem:[%s3487_s0 + $0x18] sm:$0xff] }
  0x16   :  { %691 = vmatprep.subr.mxu1 %v2010_v0  ;;  %467 = vmatpush1.msra.mxu0 %v249_v21  ;;  %v293_v62 = vld [vmem:[%s3486_s1 + $0x188] sm:$0xff]  ;;  %v292_v2 = vld [vmem:[%s3486_s1 + $0x180] sm:$0xff]  ;;  %v22_v5 = vld [vmem:[%s3487_s0 + $0x10] sm:$0xff] }
  0x17   :  { %692 = vmatpush1.msra.mxu1 %v281_v22  ;;  %468 = vmatprep.subr.mxu0 %v2010_v0  ;;  %v21_v1 = vld [vmem:[%s3487_s0 + $0x8] sm:$0xff]  ;;  %v20_v4 = vld [vmem:[%s3487_s0] sm:$0xff]  ;;  %v323_v7 = vld [vmem:[%s3486_s1 + $0x278] sm:$0xff] }
  0x18   :  { %693 = vmatprep.subr.mxu1 %v2010_v0  ;;  %469 = vmatpush1.msra.mxu0 %v248_v23  ;;  %v28_v6 = vld [vmem:[%s3487_s0 + $0x40] sm:$0xff]  ;;  %v30_v8 = vld [vmem:[%s3487_s0 + $0x50] sm:$0xff]  ;;  %v341_v9 = vld [vmem:[%s3486_s1 + $0x308] sm:$0xff] }
  0x19   :  { %694 = vmatpush1.msra.mxu1 %v280_v24  ;;  %470 = vmatprep.subr.mxu0 %v2010_v0  ;;  %v27_v10 = vld [vmem:[%s3487_s0 + $0x38] sm:$0xff]  ;;  %v29_v11 = vld [vmem:[%s3487_s0 + $0x48] sm:$0xff]  ;;  %v322_v12 = vld [vmem:[%s3486_s1 + $0x270] sm:$0xff] }
  0x1a   :  { %695 = vmatprep.subr.mxu1 %v2010_v0  ;;  %471 = vmatpush1.msra.mxu0 %v247_v25  ;;  %v35_v13 = vld [vmem:[%s3487_s0 + $0x78] sm:$0xff]  ;;  %v37_v14 = vld [vmem:[%s3487_s0 + $0x88] sm:$0xff]  ;;  %v34_v16 = vld [vmem:[%s3487_s0 + $0x70] sm:$0xff] }
  0x1b   :  { %696 = vmatpush1.msra.mxu1 %v279_v26  ;;  %472 = vmatprep.subr.mxu0 %v2010_v0  ;;  %v321_v15 = vld [vmem:[%s3486_s1 + $0x268] sm:$0xff]  ;;  %v36_v17 = vld [vmem:[%s3487_s0 + $0x80] sm:$0xff]  ;;  %v42_v18 = vld [vmem:[%s3487_s0 + $0xb0] sm:$0xff] }
  0x1c   :  { %697 = vmatprep.subr.mxu1 %v2010_v0  ;;  %473 = vmatpush1.msra.mxu0 %v246_v27  ;;  %v44_v19 = vld [vmem:[%s3487_s0 + $0xc0] sm:$0xff]  ;;  %v41_v21 = vld [vmem:[%s3487_s0 + $0xa8] sm:$0xff]  ;;  %v43_v22 = vld [vmem:[%s3487_s0 + $0xb8] sm:$0xff] }
  0x1d   :  { %698 = vmatpush1.msra.mxu1 %v278_v28  ;;  %474 = vmatprep.subr.mxu0 %v2010_v0  ;;  %v320_v20 = vld [vmem:[%s3486_s1 + $0x260] sm:$0xff]  ;;  %v49_v23 = vld [vmem:[%s3487_s0 + $0xe8] sm:$0xff]  ;;  %v51_v24 = vld [vmem:[%s3487_s0 + $0xf8] sm:$0xff] }
  0x1e   :  { %699 = vmatprep.subr.mxu1 %v2010_v0  ;;  %475 = vmatpush1.msra.mxu0 %v245_v29  ;;  %v340_v25 = vld [vmem:[%s3486_s1 + $0x300] sm:$0xff]  ;;  %v319_v26 = vld [vmem:[%s3486_s1 + $0x258] sm:$0xff]  ;;  %v50_v28 = vld [vmem:[%s3487_s0 + $0xf0] sm:$0xff] }
  0x1f   :  { %700 = vmatpush1.msra.mxu1 %v277_v30  ;;  %476 = vmatprep.subr.mxu0 %v2010_v0  ;;  %v48_v27 = vld [vmem:[%s3487_s0 + $0xe0] sm:$0xff]  ;;  %v58_v30 = vld [vmem:[%s3487_s0 + $0x130] sm:$0xff] }
  0x20   :  { %701 = vmatprep.subr.mxu1 %v2010_v0  ;;  %477 = vmatpush1.msra.mxu0 %v244_v31  ;;  %v56_v29 = vld [vmem:[%s3487_s0 + $0x120] sm:$0xff]  ;;  %v318_v31 = vld [vmem:[%s3486_s1 + $0x250] sm:$0xff] }
  0x21   :  { %702 = vmatpush1.msra.mxu1 %v276_v32  ;;  %478 = vmatprep.subr.mxu0 %v2010_v0  ;;  %v55_v32 = vld [vmem:[%s3487_s0 + $0x118] sm:$0xff] }
  0x22   :  { %703 = vmatprep.subr.mxu1 %v2010_v0  ;;  %479 = vmatpush2.msra.mxu0 %v275_v33  ;;  %v57_v33 = vld [vmem:[%s3487_s0 + $0x128] sm:$0xff] }
  0x23   :  { %704 = vmatpush2.msra.mxu1 %v307_v34  ;;  %480 = vmatprep.subr.mxu0 %v2010_v0  ;;  %v63_v34 = vld [vmem:[%s3487_s0 + $0x158] sm:$0xff] }
  0x24   :  { %705 = vmatprep.subr.mxu1 %v2010_v0  ;;  %481 = vmatpush2.msra.mxu0 %v274_v35  ;;  %v65_v35 = vld [vmem:[%s3487_s0 + $0x168] sm:$0xff] }
  0x25   :  { %706 = vmatpush2.msra.mxu1 %v306_v36  ;;  %482 = vmatprep.subr.mxu0 %v2010_v0  ;;  %v317_v36 = vld [vmem:[%s3486_s1 + $0x248] sm:$0xff] }
  0x26   :  { %707 = vmatprep.subr.mxu1 %v2010_v0  ;;  %483 = vmatpush2.msra.mxu0 %v273_v37  ;;  %v62_v37 = vld [vmem:[%s3487_s0 + $0x150] sm:$0xff] }
  0x27   :  { %708 = vmatpush2.msra.mxu1 %v305_v38  ;;  %484 = vmatprep.subr.mxu0 %v2010_v0  ;;  %v64_v38 = vld [vmem:[%s3487_s0 + $0x160] sm:$0xff] }
  0x28   :  { %709 = vmatprep.subr.mxu1 %v2010_v0  ;;  %485 = vmatpush2.msra.mxu0 %v272_v39  ;;  %v70_v39 = vld [vmem:[%s3487_s0 + $0x190] sm:$0xff] }
  0x29   :  { %710 = vmatpush2.msra.mxu1 %v304_v40  ;;  %486 = vmatprep.subr.mxu0 %v2010_v0  ;;  %v72_v40 = vld [vmem:[%s3487_s0 + $0x1a0] sm:$0xff] }
  0x2a   :  { %711 = vmatprep.subr.mxu1 %v2010_v0  ;;  %487 = vmatpush2.msra.mxu0 %v271_v41  ;;  %v316_v41 = vld [vmem:[%s3486_s1 + $0x240] sm:$0xff] }
  0x2b   :  { %712 = vmatpush2.msra.mxu1 %v303_v42  ;;  %488 = vmatprep.subr.mxu0 %v2010_v0  ;;  %v69_v42 = vld [vmem:[%s3487_s0 + $0x188] sm:$0xff] }
  0x2c   :  { %713 = vmatprep.subr.mxu1 %v2010_v0  ;;  %489 = vmatpush2.msra.mxu0 %v270_v43  ;;  %v71_v43 = vld [vmem:[%s3487_s0 + $0x198] sm:$0xff] }
  0x2d   :  { %714 = vmatpush2.msra.mxu1 %v302_v44  ;;  %490 = vmatprep.subr.mxu0 %v2010_v0  ;;  %v77_v44 = vld [vmem:[%s3487_s0 + $0x1c8] sm:$0xff] }
  0x2e   :  { %715 = vmatprep.subr.mxu1 %v2010_v0  ;;  %491 = vmatpush2.msra.mxu0 %v269_v45  ;;  %v79_v45 = vld [vmem:[%s3487_s0 + $0x1d8] sm:$0xff] }
  0x2f   :  { %716 = vmatpush2.msra.mxu1 %v301_v46  ;;  %492 = vmatprep.subr.mxu0 %v2010_v0  ;;  %v315_v46 = vld [vmem:[%s3486_s1 + $0x238] sm:$0xff] }
  0x30   :  { %717 = vmatprep.subr.mxu1 %v2010_v0  ;;  %493 = vmatpush2.msra.mxu0 %v268_v47  ;;  %v76_v47 = vld [vmem:[%s3487_s0 + $0x1c0] sm:$0xff] }
  0x31   :  { %718 = vmatpush2.msra.mxu1 %v300_v48  ;;  %494 = vmatprep.subr.mxu0 %v2010_v0  ;;  %v78_v48 = vld [vmem:[%s3487_s0 + $0x1d0] sm:$0xff] }
  0x32   :  { %719 = vmatprep.subr.mxu1 %v2010_v0  ;;  %495 = vmatpush2.msra.mxu0 %v267_v49  ;;  %v84_v49 = vld [vmem:[%s3487_s0 + $0x200] sm:$0xff] }
  0x33   :  { %720 = vmatpush2.msra.mxu1 %v299_v50  ;;  %496 = vmatprep.subr.mxu0 %v2010_v0  ;;  %v86_v50 = vld [vmem:[%s3487_s0 + $0x210] sm:$0xff] }
  0x34   :  { %721 = vmatprep.subr.mxu1 %v2010_v0  ;;  %497 = vmatpush2.msra.mxu0 %v266_v51  ;;  %v314_v51 = vld [vmem:[%s3486_s1 + $0x230] sm:$0xff] }
  0x35   :  { %722 = vmatpush2.msra.mxu1 %v298_v52  ;;  %498 = vmatprep.subr.mxu0 %v2010_v0  ;;  %v83_v52 = vld [vmem:[%s3487_s0 + $0x1f8] sm:$0xff] }
  0x36   :  { %723 = vmatprep.subr.mxu1 %v2010_v0  ;;  %499 = vmatpush2.msra.mxu0 %v265_v53  ;;  %v85_v53 = vld [vmem:[%s3487_s0 + $0x208] sm:$0xff] }
  0x37   :  { %724 = vmatpush2.msra.mxu1 %v297_v54  ;;  %500 = vmatprep.subr.mxu0 %v2010_v0  ;;  %v91_v54 = vld [vmem:[%s3487_s0 + $0x238] sm:$0xff] }
  0x38   :  { %725 = vmatprep.subr.mxu1 %v2010_v0  ;;  %501 = vmatpush2.msra.mxu0 %v264_v55  ;;  %v93_v55 = vld [vmem:[%s3487_s0 + $0x248] sm:$0xff] }
  0x39   :  { %726 = vmatpush2.msra.mxu1 %v296_v56  ;;  %502 = vmatprep.subr.mxu0 %v2010_v0  ;;  %v313_v56 = vld [vmem:[%s3486_s1 + $0x228] sm:$0xff] }
  0x3a   :  { %727 = vmatprep.subr.mxu1 %v2010_v0  ;;  %503 = vmatpush2.msra.mxu0 %v263_v57  ;;  %v90_v57 = vld [vmem:[%s3487_s0 + $0x230] sm:$0xff] }
  0x3b   :  { %728 = vmatpush2.msra.mxu1 %v295_v58  ;;  %504 = vmatprep.subr.mxu0 %v2010_v0  ;;  %v92_v58 = vld [vmem:[%s3487_s0 + $0x240] sm:$0xff] }
  0x3c   :  { %729 = vmatprep.subr.mxu1 %v2010_v0  ;;  %505 = vmatpush2.msra.mxu0 %v262_v59  ;;  %v98_v59 = vld [vmem:[%s3487_s0 + $0x270] sm:$0xff] }
  0x3d   :  { %730 = vmatpush2.msra.mxu1 %v294_v60  ;;  %506 = vmatprep.subr.mxu0 %v2010_v0  ;;  %v100_v60 = vld [vmem:[%s3487_s0 + $0x280] sm:$0xff] }
  0x3e   :  { %731 = vmatprep.subr.mxu1 %v2010_v0  ;;  %507 = vmatpush2.msra.mxu0 %v261_v61  ;;  %v312_v61 = vld [vmem:[%s3486_s1 + $0x220] sm:$0xff] }
  0x3f   :  { %732 = vmatpush2.msra.mxu1 %v293_v62  ;;  %508 = vmatprep.subr.mxu0 %v2010_v0  ;;  %v97_v62 = vld [vmem:[%s3487_s0 + $0x268] sm:$0xff] }
  0x40   :  { %733 = vmatprep.subr.mxu1 %v2010_v0  ;;  %509 = vmatpush2.msra.mxu0 %v260_v63  ;;  %v99_v63 = vld [vmem:[%s3487_s0 + $0x278] sm:$0xff] }
  0x41   :  { %510 = vmatprep.mubr.f32.mxu0 %v21_v1  ;;  %734 = vmatpush2.msra.mxu1 %v292_v2  ;;  %v105_v1 = vld [vmem:[%s3487_s0 + $0x2a8] sm:$0xff]  ;;  %v107_v2 = vld [vmem:[%s3487_s0 + $0x2b8] sm:$0xff] }
  0x42   :  { %735 = vmatprep.mubr.f32.mxu1 %v23_v3  ;;  %511 = vmatmul.mubr.f32.vlgmr.msra.gmra.mxu0 %v20_v4  ;;  %v311_v3 = vld [vmem:[%s3486_s1 + $0x218] sm:$0xff]  ;;  %v104_v4 = vld [vmem:[%s3487_s0 + $0x2a0] sm:$0xff] }
  0x43   :  { %736 = vmatmul.mubr.f32.vlgmr.msra.gmra.mxu1 %v22_v5  ;;  %896 = vmatprep.subr.mxu0 %v2010_v0  ;;  %v106_v5 = vld [vmem:[%s3487_s0 + $0x2b0] sm:$0xff] }
  0x44   :  { %515 = vmatprep.mubr.f32.mxu0 %v28_v6  ;;  %897 = vmatpush1.msra.mxu0 %v323_v7  ;;  %v112_v6 = vld [vmem:[%s3487_s0 + $0x2e0] sm:$0xff]  ;;  %v114_v7 = vld [vmem:[%s3487_s0 + $0x2f0] sm:$0xff] }
  0x45   :  { %740 = vmatprep.mubr.f32.mxu1 %v30_v8  ;;  %898 = vmatprep.subr.mxu0 %v2010_v0  ;;  %v310_v8 = vld [vmem:[%s3486_s1 + $0x210] sm:$0xff] }
  0x46   :  { %1895 = vmatprep.subr.mxu1 %v341_v9  ;;  %516 = vmatmul.mubr.f32.gmra.mxu0 %v27_v10  ;;  %v113_v10 = vld [vmem:[%s3487_s0 + $0x2e8] sm:$0xff] }
  0x47   :  { %741 = vmatmul.mubr.f32.gmra.mxu1 %v29_v11  ;;  %899 = vmatpush1.msra.mxu0 %v322_v12  ;;  %v119_v11 = vld [vmem:[%s3487_s0 + $0x318] sm:$0xff]  ;;  %v121_v12 = vld [vmem:[%s3487_s0 + $0x328] sm:$0xff] }
  0x48   :  { %520 = vmatprep.mubr.f32.mxu0 %v35_v13  ;;  %745 = vmatprep.mubr.f32.mxu1 %v37_v14  ;;  %v309_v13 = vld [vmem:[%s3486_s1 + $0x208] sm:$0xff]  ;;  %v118_v14 = vld [vmem:[%s3487_s0 + $0x310] sm:$0xff] }
  0x49   :  { %900 = vmatprep.subr.mxu0 %v2010_v0  ;;  %1896 = vmatpush3.msra.mxu1 %v341_v9  ;;  %v111_v9 = vld [vmem:[%s3487_s0 + $0x2d8] sm:$0xff] }
  0x4a   :  { %901 = vmatpush1.msra.mxu0 %v321_v15  ;;  %1897 = vmatprep.subr.mxu1 %v340_v25  ;;  %v120_v15 = vld [vmem:[%s3487_s0 + $0x320] sm:$0xff] }
  0x4b   :  { %521 = vmatmul.mubr.f32.gmra.mxu0 %v34_v16  ;;  %746 = vmatmul.mubr.f32.gmra.mxu1 %v36_v17  ;;  %v126_v16 = vld [vmem:[%s3487_s0 + $0x350] sm:$0xff]  ;;  %v128_v17 = vld [vmem:[%s3487_s0 + $0x360] sm:$0xff] }
  0x4c   :  { %525 = vmatprep.mubr.f32.mxu0 %v42_v18  ;;  %750 = vmatprep.mubr.f32.mxu1 %v44_v19  ;;  %v308_v18 = vld [vmem:[%s3486_s1 + $0x200] sm:$0xff]  ;;  %v125_v19 = vld [vmem:[%s3487_s0 + $0x348] sm:$0xff] }
  0x4d   :  { %902 = vmatprep.subr.mxu0 %v2010_v0  ;;  %1898 = vmatpush3.msra.mxu1 %v340_v25  ;;  %v134_v25 = vld [vmem:[%s3487_s0 + $0x390] sm:$0xff] }
  0x4e   :  { %903 = vmatpush1.msra.mxu0 %v320_v20  ;;  %v127_v20 = vld [vmem:[%s3487_s0 + $0x358] sm:$0xff] }
  0x4f   :  { %526 = vmatmul.mubr.f32.gmra.mxu0 %v41_v21  ;;  %751 = vmatmul.mubr.f32.gmra.mxu1 %v43_v22  ;;  %v133_v21 = vld [vmem:[%s3487_s0 + $0x388] sm:$0xff]  ;;  %v135_v22 = vld [vmem:[%s3487_s0 + $0x398] sm:$0xff] }
  0x50   :  { %530 = vmatprep.mubr.f32.mxu0 %v49_v23  ;;  %755 = vmatprep.mubr.f32.mxu1 %v51_v24  ;;  %v339_v23 = vld [vmem:[%s3486_s1 + $0x2f8] sm:$0xff]  ;;  %v132_v24 = vld [vmem:[%s3487_s0 + $0x380] sm:$0xff] }
  0x51   :  { %904 = vmatprep.subr.mxu0 %v2010_v0 }
  0x52   :  { %905 = vmatpush1.msra.mxu0 %v319_v26  ;;  %v140_v26 = vld [vmem:[%s3487_s0 + $0x3c0] sm:$0xff] }
  0x53   :  { %531 = vmatmul.mubr.f32.gmra.mxu0 %v48_v27  ;;  %756 = vmatmul.mubr.f32.gmra.mxu1 %v50_v28  ;;  %v142_v27 = vld [vmem:[%s3487_s0 + $0x3d0] sm:$0xff] }
  0x54   :  { %535 = vmatprep.mubr.f32.mxu0 %v56_v29  ;;  %760 = vmatprep.mubr.f32.mxu1 %v58_v30  ;;  %v338_v28 = vld [vmem:[%s3486_s1 + $0x2f0] sm:$0xff]  ;;  %v139_v29 = vld [vmem:[%s3487_s0 + $0x3b8] sm:$0xff]  ;;  %v141_v30 = vld [vmem:[%s3487_s0 + $0x3c8] sm:$0xff] }
  0x55   :  { %906 = vmatprep.subr.mxu0 %v2010_v0 }
  0x56   :  { %907 = vmatpush1.msra.mxu0 %v318_v31  ;;  %v147_v31 = vld [vmem:[%s3487_s0 + $0x3f8] sm:$0xff] }
  0x57   :  { %536 = vmatmul.mubr.f32.gmra.mxu0 %v55_v32  ;;  %761 = vmatmul.mubr.f32.gmra.mxu1 %v57_v33  ;;  %v149_v32 = vld [vmem:[%s3487_s0 + $0x408] sm:$0xff] }
  0x58   :  { %540 = vmatprep.mubr.f32.mxu0 %v63_v34  ;;  %765 = vmatprep.mubr.f32.mxu1 %v65_v35  ;;  %v337_v33 = vld [vmem:[%s3486_s1 + $0x2e8] sm:$0xff]  ;;  %v146_v34 = vld [vmem:[%s3487_s0 + $0x3f0] sm:$0xff]  ;;  %v148_v35 = vld [vmem:[%s3487_s0 + $0x400] sm:$0xff] }
  0x59   :  { %908 = vmatprep.subr.mxu0 %v2010_v0 }
  0x5a   :  { %909 = vmatpush1.msra.mxu0 %v317_v36  ;;  %v154_v36 = vld [vmem:[%s3487_s0 + $0x430] sm:$0xff] }
  0x5b   :  { %541 = vmatmul.mubr.f32.gmra.mxu0 %v62_v37  ;;  %766 = vmatmul.mubr.f32.gmra.mxu1 %v64_v38  ;;  %v156_v37 = vld [vmem:[%s3487_s0 + $0x440] sm:$0xff] }
  0x5c   :  { %545 = vmatprep.mubr.f32.mxu0 %v70_v39  ;;  %770 = vmatprep.mubr.f32.mxu1 %v72_v40  ;;  %v336_v38 = vld [vmem:[%s3486_s1 + $0x2e0] sm:$0xff]  ;;  %v153_v39 = vld [vmem:[%s3487_s0 + $0x428] sm:$0xff]  ;;  %v155_v40 = vld [vmem:[%s3487_s0 + $0x438] sm:$0xff] }
  0x5d   :  { %910 = vmatprep.subr.mxu0 %v2010_v0 }
  0x5e   :  { %911 = vmatpush1.msra.mxu0 %v316_v41  ;;  %v161_v41 = vld [vmem:[%s3487_s0 + $0x468] sm:$0xff] }
  0x5f   :  { %546 = vmatmul.mubr.f32.gmra.mxu0 %v69_v42  ;;  %771 = vmatmul.mubr.f32.gmra.mxu1 %v71_v43  ;;  %v163_v42 = vld [vmem:[%s3487_s0 + $0x478] sm:$0xff] }
  0x60   :  { %550 = vmatprep.mubr.f32.mxu0 %v77_v44  ;;  %775 = vmatprep.mubr.f32.mxu1 %v79_v45  ;;  %v335_v43 = vld [vmem:[%s3486_s1 + $0x2d8] sm:$0xff]  ;;  %v160_v44 = vld [vmem:[%s3487_s0 + $0x460] sm:$0xff]  ;;  %v162_v45 = vld [vmem:[%s3487_s0 + $0x470] sm:$0xff] }
  0x61   :  { %912 = vmatprep.subr.mxu0 %v2010_v0 }
  0x62   :  { %913 = vmatpush1.msra.mxu0 %v315_v46  ;;  %v168_v46 = vld [vmem:[%s3487_s0 + $0x4a0] sm:$0xff] }
  0x63   :  { %551 = vmatmul.mubr.f32.gmra.mxu0 %v76_v47  ;;  %776 = vmatmul.mubr.f32.gmra.mxu1 %v78_v48  ;;  %v170_v47 = vld [vmem:[%s3487_s0 + $0x4b0] sm:$0xff] }
  0x64   :  { %555 = vmatprep.mubr.f32.mxu0 %v84_v49  ;;  %780 = vmatprep.mubr.f32.mxu1 %v86_v50  ;;  %v334_v48 = vld [vmem:[%s3486_s1 + $0x2d0] sm:$0xff]  ;;  %v167_v49 = vld [vmem:[%s3487_s0 + $0x498] sm:$0xff]  ;;  %v169_v50 = vld [vmem:[%s3487_s0 + $0x4a8] sm:$0xff] }
  0x65   :  { %914 = vmatprep.subr.mxu0 %v2010_v0 }
  0x66   :  { %915 = vmatpush1.msra.mxu0 %v314_v51  ;;  %v175_v51 = vld [vmem:[%s3487_s0 + $0x4d8] sm:$0xff] }
  0x67   :  { %556 = vmatmul.mubr.f32.gmra.mxu0 %v83_v52  ;;  %781 = vmatmul.mubr.f32.gmra.mxu1 %v85_v53  ;;  %v177_v52 = vld [vmem:[%s3487_s0 + $0x4e8] sm:$0xff] }
  0x68   :  { %560 = vmatprep.mubr.f32.mxu0 %v91_v54  ;;  %785 = vmatprep.mubr.f32.mxu1 %v93_v55  ;;  %v333_v53 = vld [vmem:[%s3486_s1 + $0x2c8] sm:$0xff]  ;;  %v174_v54 = vld [vmem:[%s3487_s0 + $0x4d0] sm:$0xff]  ;;  %v176_v55 = vld [vmem:[%s3487_s0 + $0x4e0] sm:$0xff] }
  0x69   :  { %916 = vmatprep.subr.mxu0 %v2010_v0 }
  0x6a   :  { %917 = vmatpush1.msra.mxu0 %v313_v56  ;;  %v182_v56 = vld [vmem:[%s3487_s0 + $0x510] sm:$0xff] }
  0x6b   :  { %561 = vmatmul.mubr.f32.gmra.mxu0 %v90_v57  ;;  %786 = vmatmul.mubr.f32.gmra.mxu1 %v92_v58  ;;  %v184_v57 = vld [vmem:[%s3487_s0 + $0x520] sm:$0xff] }
  0x6c   :  { %565 = vmatprep.mubr.f32.mxu0 %v98_v59  ;;  %790 = vmatprep.mubr.f32.mxu1 %v100_v60  ;;  %v332_v58 = vld [vmem:[%s3486_s1 + $0x2c0] sm:$0xff]  ;;  %v181_v59 = vld [vmem:[%s3487_s0 + $0x508] sm:$0xff]  ;;  %v183_v60 = vld [vmem:[%s3487_s0 + $0x518] sm:$0xff] }
  0x6d   :  { %918 = vmatprep.subr.mxu0 %v2010_v0 }
  0x6e   :  { %919 = vmatpush1.msra.mxu0 %v312_v61  ;;  %v189_v61 = vld [vmem:[%s3487_s0 + $0x548] sm:$0xff] }
  0x6f   :  { %566 = vmatmul.mubr.f32.gmra.mxu0 %v97_v62  ;;  %791 = vmatmul.mubr.f32.gmra.mxu1 %v99_v63  ;;  %v191_v62 = vld [vmem:[%s3487_s0 + $0x558] sm:$0xff] }
  0x70   :  { %570 = vmatprep.mubr.f32.mxu0 %v105_v1  ;;  %795 = vmatprep.mubr.f32.mxu1 %v107_v2  ;;  %v331_v63 = vld [vmem:[%s3486_s1 + $0x2b8] sm:$0xff]  ;;  %v188_v1 = vld [vmem:[%s3487_s0 + $0x540] sm:$0xff]  ;;  %v190_v2 = vld [vmem:[%s3487_s0 + $0x550] sm:$0xff] }
  0x71   :  { %920 = vmatprep.subr.mxu0 %v2010_v0 }
  0x72   :  { %921 = vmatpush1.msra.mxu0 %v311_v3  ;;  %v196_v3 = vld [vmem:[%s3487_s0 + $0x580] sm:$0xff] }
  0x73   :  { %571 = vmatmul.mubr.f32.gmra.mxu0 %v104_v4  ;;  %796 = vmatmul.mubr.f32.gmra.mxu1 %v106_v5  ;;  %v198_v4 = vld [vmem:[%s3487_s0 + $0x590] sm:$0xff] }
  0x74   :  { %575 = vmatprep.mubr.f32.mxu0 %v112_v6  ;;  %800 = vmatprep.mubr.f32.mxu1 %v114_v7  ;;  %v330_v5 = vld [vmem:[%s3486_s1 + $0x2b0] sm:$0xff]  ;;  %v195_v6 = vld [vmem:[%s3487_s0 + $0x578] sm:$0xff]  ;;  %v197_v7 = vld [vmem:[%s3487_s0 + $0x588] sm:$0xff] }
  0x75   :  { %922 = vmatprep.subr.mxu0 %v2010_v0 }
  0x76   :  { %923 = vmatpush1.msra.mxu0 %v310_v8  ;;  %v203_v8 = vld [vmem:[%s3487_s0 + $0x5b8] sm:$0xff] }
  0x77   :  { %576 = vmatmul.mubr.f32.gmra.mxu0 %v111_v9  ;;  %801 = vmatmul.mubr.f32.gmra.mxu1 %v113_v10  ;;  %v205_v9 = vld [vmem:[%s3487_s0 + $0x5c8] sm:$0xff] }
  0x78   :  { %580 = vmatprep.mubr.f32.mxu0 %v119_v11  ;;  %805 = vmatprep.mubr.f32.mxu1 %v121_v12  ;;  %v329_v10 = vld [vmem:[%s3486_s1 + $0x2a8] sm:$0xff]  ;;  %v202_v11 = vld [vmem:[%s3487_s0 + $0x5b0] sm:$0xff]  ;;  %v204_v12 = vld [vmem:[%s3487_s0 + $0x5c0] sm:$0xff] }
  0x79   :  { %924 = vmatprep.subr.mxu0 %v2010_v0 }
  0x7a   :  { %925 = vmatpush1.msra.mxu0 %v309_v13  ;;  %v210_v13 = vld [vmem:[%s3487_s0 + $0x5f0] sm:$0xff] }
  0x7b   :  { %581 = vmatmul.mubr.f32.gmra.mxu0 %v118_v14  ;;  %806 = vmatmul.mubr.f32.gmra.mxu1 %v120_v15  ;;  %v212_v14 = vld [vmem:[%s3487_s0 + $0x600] sm:$0xff] }
  0x7c   :  { %585 = vmatprep.mubr.f32.mxu0 %v126_v16  ;;  %810 = vmatprep.mubr.f32.mxu1 %v128_v17  ;;  %v328_v15 = vld [vmem:[%s3486_s1 + $0x2a0] sm:$0xff]  ;;  %v209_v16 = vld [vmem:[%s3487_s0 + $0x5e8] sm:$0xff]  ;;  %v211_v17 = vld [vmem:[%s3487_s0 + $0x5f8] sm:$0xff] }
  0x7d   :  { %926 = vmatprep.subr.mxu0 %v2010_v0 }
  0x7e   :  { %927 = vmatpush1.msra.mxu0 %v308_v18  ;;  %v217_v18 = vld [vmem:[%s3487_s0 + $0x628] sm:$0xff] }
  0x7f   :  { %586 = vmatmul.mubr.f32.gmra.mxu0 %v125_v19  ;;  %811 = vmatmul.mubr.f32.gmra.mxu1 %v127_v20  ;;  %v219_v19 = vld [vmem:[%s3487_s0 + $0x638] sm:$0xff] }
  0x80   :  { %590 = vmatprep.mubr.f32.mxu0 %v133_v21  ;;  %815 = vmatprep.mubr.f32.mxu1 %v135_v22  ;;  %v327_v20 = vld [vmem:[%s3486_s1 + $0x298] sm:$0xff]  ;;  %v216_v21 = vld [vmem:[%s3487_s0 + $0x620] sm:$0xff]  ;;  %v218_v22 = vld [vmem:[%s3487_s0 + $0x630] sm:$0xff] }
  0x81   :  { %928 = vmatprep.subr.mxu0 %v2010_v0 }
  0x82   :  { %929 = vmatpush2.msra.mxu0 %v339_v23  ;;  %v224_v23 = vld [vmem:[%s3487_s0 + $0x660] sm:$0xff] }
  0x83   :  { %591 = vmatmul.mubr.f32.gmra.mxu0 %v132_v24  ;;  %816 = vmatmul.mubr.f32.gmra.mxu1 %v134_v25  ;;  %v226_v24 = vld [vmem:[%s3487_s0 + $0x670] sm:$0xff] }
  0x84   :  { %595 = vmatprep.mubr.f32.mxu0 %v140_v26  ;;  %820 = vmatprep.mubr.f32.mxu1 %v142_v27  ;;  %v326_v25 = vld [vmem:[%s3486_s1 + $0x290] sm:$0xff]  ;;  %v223_v26 = vld [vmem:[%s3487_s0 + $0x658] sm:$0xff]  ;;  %v225_v27 = vld [vmem:[%s3487_s0 + $0x668] sm:$0xff] }
  0x85   :  { %930 = vmatprep.subr.mxu0 %v2010_v0 }
  0x86   :  { %931 = vmatpush2.msra.mxu0 %v338_v28  ;;  %v231_v28 = vld [vmem:[%s3487_s0 + $0x698] sm:$0xff] }
  0x87   :  { %596 = vmatmul.mubr.f32.gmra.mxu0 %v139_v29  ;;  %821 = vmatmul.mubr.f32.gmra.mxu1 %v141_v30  ;;  %v233_v29 = vld [vmem:[%s3487_s0 + $0x6a8] sm:$0xff] }
  0x88   :  { %600 = vmatprep.mubr.f32.mxu0 %v147_v31  ;;  %825 = vmatprep.mubr.f32.mxu1 %v149_v32  ;;  %v325_v30 = vld [vmem:[%s3486_s1 + $0x288] sm:$0xff]  ;;  %v230_v31 = vld [vmem:[%s3487_s0 + $0x690] sm:$0xff]  ;;  %v232_v32 = vld [vmem:[%s3487_s0 + $0x6a0] sm:$0xff] }
  0x89   :  { %932 = vmatprep.subr.mxu0 %v2010_v0 }
  0x8a   :  { %933 = vmatpush2.msra.mxu0 %v337_v33  ;;  %v238_v33 = vld [vmem:[%s3487_s0 + $0x6d0] sm:$0xff] }
  0x8b   :  { %601 = vmatmul.mubr.f32.gmra.mxu0 %v146_v34  ;;  %826 = vmatmul.mubr.f32.gmra.mxu1 %v148_v35  ;;  %v240_v34 = vld [vmem:[%s3487_s0 + $0x6e0] sm:$0xff] }
  0x8c   :  { %605 = vmatprep.mubr.f32.mxu0 %v154_v36  ;;  %830 = vmatprep.mubr.f32.mxu1 %v156_v37  ;;  %v324_v35 = vld [vmem:[%s3486_s1 + $0x280] sm:$0xff]  ;;  %v237_v36 = vld [vmem:[%s3487_s0 + $0x6c8] sm:$0xff]  ;;  %v239_v37 = vld [vmem:[%s3487_s0 + $0x6d8] sm:$0xff] }
  0x8d   :  { %934 = vmatprep.subr.mxu0 %v2010_v0 }
  0x8e   :  { %935 = vmatpush2.msra.mxu0 %v336_v38  ;;  %v25_v38 = vld [vmem:[%s3487_s0 + $0x28] sm:$0xff] }
  0x8f   :  { %606 = vmatmul.mubr.f32.gmra.mxu0 %v153_v39  ;;  %831 = vmatmul.mubr.f32.gmra.mxu1 %v155_v40  ;;  %v26_v39 = vld [vmem:[%s3487_s0 + $0x30] sm:$0xff]  ;;  %v24_v40 = vld [vmem:[%s3487_s0 + $0x20] sm:$0xff] }
  0x90   :  { %610 = vmatprep.mubr.f32.mxu0 %v161_v41  ;;  %835 = vmatprep.mubr.f32.mxu1 %v163_v42  ;;  %v32_v41 = vld [vmem:[%s3487_s0 + $0x60] sm:$0xff] }
  0x91   :  { %936 = vmatprep.subr.mxu0 %v2010_v0  ;;  %v40_v42 = vld [vmem:[%s3487_s0 + $0xa0] sm:$0xff] }
  0x92   :  { %937 = vmatpush2.msra.mxu0 %v335_v43  ;;  %v31_v43 = vld [vmem:[%s3487_s0 + $0x58] sm:$0xff] }
  0x93   :  { %611 = vmatmul.mubr.f32.gmra.mxu0 %v160_v44  ;;  %836 = vmatmul.mubr.f32.gmra.mxu1 %v162_v45  ;;  %v47_v44 = vld [vmem:[%s3487_s0 + $0xd8] sm:$0xff] }
  0x94   :  { %615 = vmatprep.mubr.f32.mxu0 %v168_v46  ;;  %840 = vmatprep.mubr.f32.mxu1 %v170_v47  ;;  %v39_v45 = vld [vmem:[%s3487_s0 + $0x98] sm:$0xff]  ;;  %v54_v46 = vld [vmem:[%s3487_s0 + $0x110] sm:$0xff] }
  0x95   :  { %938 = vmatprep.subr.mxu0 %v2010_v0  ;;  %v38_v47 = vld [vmem:[%s3487_s0 + $0x90] sm:$0xff] }
  0x96   :  { %939 = vmatpush2.msra.mxu0 %v334_v48  ;;  %v61_v48 = vld [vmem:[%s3487_s0 + $0x148] sm:$0xff] }
  0x97   :  { %616 = vmatmul.mubr.f32.gmra.mxu0 %v167_v49  ;;  %841 = vmatmul.mubr.f32.gmra.mxu1 %v169_v50  ;;  %v46_v49 = vld [vmem:[%s3487_s0 + $0xd0] sm:$0xff]  ;;  %v68_v50 = vld [vmem:[%s3487_s0 + $0x180] sm:$0xff] }
  0x98   :  { %620 = vmatprep.mubr.f32.mxu0 %v175_v51  ;;  %845 = vmatprep.mubr.f32.mxu1 %v177_v52  ;;  %v45_v51 = vld [vmem:[%s3487_s0 + $0xc8] sm:$0xff]  ;;  %v75_v52 = vld [vmem:[%s3487_s0 + $0x1b8] sm:$0xff] }
  0x99   :  { %940 = vmatprep.subr.mxu0 %v2010_v0 }
  0x9a   :  { %941 = vmatpush2.msra.mxu0 %v333_v53  ;;  %v53_v53 = vld [vmem:[%s3487_s0 + $0x108] sm:$0xff] }
  0x9b   :  { %621 = vmatmul.mubr.f32.gmra.mxu0 %v174_v54  ;;  %846 = vmatmul.mubr.f32.gmra.mxu1 %v176_v55  ;;  %v82_v54 = vld [vmem:[%s3487_s0 + $0x1f0] sm:$0xff]  ;;  %v52_v55 = vld [vmem:[%s3487_s0 + $0x100] sm:$0xff] }
  0x9c   :  { %625 = vmatprep.mubr.f32.mxu0 %v182_v56  ;;  %850 = vmatprep.mubr.f32.mxu1 %v184_v57  ;;  %v89_v56 = vld [vmem:[%s3487_s0 + $0x228] sm:$0xff]  ;;  %v60_v57 = vld [vmem:[%s3487_s0 + $0x140] sm:$0xff] }
  0x9d   :  { %942 = vmatprep.subr.mxu0 %v2010_v0 }
  0x9e   :  { %943 = vmatpush2.msra.mxu0 %v332_v58  ;;  %v96_v58 = vld [vmem:[%s3487_s0 + $0x260] sm:$0xff] }
  0x9f   :  { %626 = vmatmul.mubr.f32.gmra.mxu0 %v181_v59  ;;  %851 = vmatmul.mubr.f32.gmra.mxu1 %v183_v60  ;;  %v59_v59 = vld [vmem:[%s3487_s0 + $0x138] sm:$0xff] }
  0xa0   :  { %630 = vmatprep.mubr.f32.mxu0 %v189_v61  ;;  %855 = vmatprep.mubr.f32.mxu1 %v191_v62  ;;  %v103_v60 = vld [vmem:[%s3487_s0 + $0x298] sm:$0xff]  ;;  %v110_v62 = vld [vmem:[%s3487_s0 + $0x2d0] sm:$0xff] }
  0xa1   :  { %944 = vmatprep.subr.mxu0 %v2010_v0  ;;  %v67_v61 = vld [vmem:[%s3487_s0 + $0x178] sm:$0xff] }
  0xa2   :  { %945 = vmatpush2.msra.mxu0 %v331_v63  ;;  %v66_v63 = vld [vmem:[%s3487_s0 + $0x170] sm:$0xff] }
  0xa3   :  { %631 = vmatmul.mubr.f32.gmra.mxu0 %v188_v1  ;;  %856 = vmatmul.mubr.f32.gmra.mxu1 %v190_v2  ;;  %v117_v1 = vld [vmem:[%s3487_s0 + $0x308] sm:$0xff]  ;;  %v74_v2 = vld [vmem:[%s3487_s0 + $0x1b0] sm:$0xff] }
  0xa4   :  { %635 = vmatprep.mubr.f32.mxu0 %v196_v3  ;;  %860 = vmatprep.mubr.f32.mxu1 %v198_v4  ;;  %v124_v3 = vld [vmem:[%s3487_s0 + $0x340] sm:$0xff]  ;;  %v73_v4 = vld [vmem:[%s3487_s0 + $0x1a8] sm:$0xff] }
  0xa5   :  { %946 = vmatprep.subr.mxu0 %v2010_v0 }
  0xa6   :  { %947 = vmatpush2.msra.mxu0 %v330_v5  ;;  %v131_v5 = vld [vmem:[%s3487_s0 + $0x378] sm:$0xff] }
  0xa7   :  { %636 = vmatmul.mubr.f32.gmra.mxu0 %v195_v6  ;;  %861 = vmatmul.mubr.f32.gmra.mxu1 %v197_v7  ;;  %v81_v6 = vld [vmem:[%s3487_s0 + $0x1e8] sm:$0xff]  ;;  %v138_v7 = vld [vmem:[%s3487_s0 + $0x3b0] sm:$0xff] }
  0xa8   :  { %640 = vmatprep.mubr.f32.mxu0 %v203_v8  ;;  %865 = vmatprep.mubr.f32.mxu1 %v205_v9  ;;  %v80_v8 = vld [vmem:[%s3487_s0 + $0x1e0] sm:$0xff]  ;;  %v145_v9 = vld [vmem:[%s3487_s0 + $0x3e8] sm:$0xff] }
  0xa9   :  { %948 = vmatprep.subr.mxu0 %v2010_v0 }
  0xaa   :  { %949 = vmatpush2.msra.mxu0 %v329_v10  ;;  %v88_v10 = vld [vmem:[%s3487_s0 + $0x220] sm:$0xff] }
  0xab   :  { %641 = vmatmul.mubr.f32.gmra.mxu0 %v202_v11  ;;  %866 = vmatmul.mubr.f32.gmra.mxu1 %v204_v12  ;;  %v152_v11 = vld [vmem:[%s3487_s0 + $0x420] sm:$0xff]  ;;  %v87_v12 = vld [vmem:[%s3487_s0 + $0x218] sm:$0xff] }
  0xac   :  { %645 = vmatprep.mubr.f32.mxu0 %v210_v13  ;;  %870 = vmatprep.mubr.f32.mxu1 %v212_v14  ;;  %v159_v13 = vld [vmem:[%s3487_s0 + $0x458] sm:$0xff] }
  0xad   :  { %950 = vmatprep.subr.mxu0 %v2010_v0  ;;  %v95_v14 = vld [vmem:[%s3487_s0 + $0x258] sm:$0xff] }
  0xae   :  { %951 = vmatpush2.msra.mxu0 %v328_v15  ;;  %v166_v15 = vld [vmem:[%s3487_s0 + $0x490] sm:$0xff] }
  0xaf   :  { %646 = vmatmul.mubr.f32.gmra.mxu0 %v209_v16  ;;  %871 = vmatmul.mubr.f32.gmra.mxu1 %v211_v17  ;;  %v94_v16 = vld [vmem:[%s3487_s0 + $0x250] sm:$0xff]  ;;  %v173_v17 = vld [vmem:[%s3487_s0 + $0x4c8] sm:$0xff] }
  0xb0   :  { %650 = vmatprep.mubr.f32.mxu0 %v217_v18  ;;  %875 = vmatprep.mubr.f32.mxu1 %v219_v19  ;;  %v102_v18 = vld [vmem:[%s3487_s0 + $0x290] sm:$0xff]  ;;  %v180_v19 = vld [vmem:[%s3487_s0 + $0x500] sm:$0xff] }
  0xb1   :  { %952 = vmatprep.subr.mxu0 %v2010_v0 }
  0xb2   :  { %953 = vmatpush2.msra.mxu0 %v327_v20  ;;  %v101_v20 = vld [vmem:[%s3487_s0 + $0x288] sm:$0xff] }
  0xb3   :  { %651 = vmatmul.mubr.f32.gmra.mxu0 %v216_v21  ;;  %876 = vmatmul.mubr.f32.gmra.mxu1 %v218_v22  ;;  %v187_v21 = vld [vmem:[%s3487_s0 + $0x538] sm:$0xff]  ;;  %v109_v22 = vld [vmem:[%s3487_s0 + $0x2c8] sm:$0xff] }
  0xb4   :  { %655 = vmatprep.mubr.f32.mxu0 %v224_v23  ;;  %880 = vmatprep.mubr.f32.mxu1 %v226_v24  ;;  %v194_v23 = vld [vmem:[%s3487_s0 + $0x570] sm:$0xff]  ;;  %v108_v24 = vld [vmem:[%s3487_s0 + $0x2c0] sm:$0xff] }
  0xb5   :  { %954 = vmatprep.subr.mxu0 %v2010_v0 }
  0xb6   :  { %955 = vmatpush2.msra.mxu0 %v326_v25  ;;  %v201_v25 = vld [vmem:[%s3487_s0 + $0x5a8] sm:$0xff] }
  0xb7   :  { %656 = vmatmul.mubr.f32.gmra.mxu0 %v223_v26  ;;  %881 = vmatmul.mubr.f32.gmra.mxu1 %v225_v27  ;;  %v116_v26 = vld [vmem:[%s3487_s0 + $0x300] sm:$0xff] }
  0xb8   :  { %660 = vmatprep.mubr.f32.mxu0 %v231_v28  ;;  %885 = vmatprep.mubr.f32.mxu1 %v233_v29  ;;  %v208_v27 = vld [vmem:[%s3487_s0 + $0x5e0] sm:$0xff]  ;;  %v115_v28 = vld [vmem:[%s3487_s0 + $0x2f8] sm:$0xff] }
  0xb9   :  { %956 = vmatprep.subr.mxu0 %v2010_v0  ;;  %v215_v29 = vld [vmem:[%s3487_s0 + $0x618] sm:$0xff] }
  0xba   :  { %957 = vmatpush2.msra.mxu0 %v325_v30  ;;  %v123_v30 = vld [vmem:[%s3487_s0 + $0x338] sm:$0xff] }
  0xbb   :  { %661 = vmatmul.mubr.f32.gmra.mxu0 %v230_v31  ;;  %886 = vmatmul.mubr.f32.gmra.mxu1 %v232_v32  ;;  %v222_v31 = vld [vmem:[%s3487_s0 + $0x650] sm:$0xff] }
  0xbc   :  { %665 = vmatprep.mubr.f32.mxu0 %v238_v33  ;;  %890 = vmatprep.mubr.f32.mxu1 %v240_v34  ;;  %v122_v32 = vld [vmem:[%s3487_s0 + $0x330] sm:$0xff]  ;;  %v229_v33 = vld [vmem:[%s3487_s0 + $0x688] sm:$0xff] }
  0xbd   :  { %958 = vmatprep.subr.mxu0 %v2010_v0  ;;  %v33_v0 = vld [vmem:[%s3487_s0 + $0x68] sm:$0xff]  ;;  %v130_v34 = vld [vmem:[%s3487_s0 + $0x370] sm:$0xff] }
  0xbe   :  { %959 = vmatpush2.msra.mxu0 %v324_v35  ;;  %v236_v35 = vld [vmem:[%s3487_s0 + $0x6c0] sm:$0xff] }
  0xbf   :  { %666 = vmatmul.mubr.f32.gmra.mxu0 %v237_v36  ;;  %891 = vmatmul.mubr.f32.gmra.mxu1 %v239_v37  ;;  %v129_v36 = vld [vmem:[%s3487_s0 + $0x368] sm:$0xff]  ;;  %v243_v37 = vld [vmem:[%s3487_s0 + $0x6f8] sm:$0xff] }
  0xc0   :  { %960 = vmatprep.mubr.f32.mxu0 %v25_v38  ;;  %1899 = vmatprep.mubr.msk.f32.mxu1 %vm349_vm0, %v26_v39  ;;  %v137_v38 = vld [vmem:[%s3487_s0 + $0x3a8] sm:$0xff]  ;;  %v1384_v39 = vld [vmem:[%s3489_s3 + $0x30] sm:$0x3] }
  0xc1   :  { %1947 = vmatprep.subr.msk.mxu1 %vm1489_vm1, %v1384_v39 }
  0xc3   :  { %961 = vmatmul.mubr.f32.vlgmr.msra.gmra.mxu0 %v24_v40  ;;  %1900 = vmatmul.mubr.msk.f32.vlgmr.msra.gmra.mxu1 %vm349_vm0, %v33_v0  ;;  %v136_v40 = vld [vmem:[%s3487_s0 + $0x3a0] sm:$0xff] }
  0xc4   :  { %965 = vmatprep.mubr.f32.mxu0 %v32_v41  ;;  %1902 = vmatprep.mubr.msk.f32.mxu1 %vm349_vm0, %v40_v42  ;;  %v3051_v0 = vld [vmem:[%s3488_s2] ss:$0 sm:$0xff]  ;;  %v1383_v42 = vld [vmem:[%s3489_s3 + $0x28] sm:$0xff] }
  0xc5   :  { %v144_v41 = vld [vmem:[%s3487_s0 + $0x3e0] sm:$0xff]  ;;  %1948 = vmatpush3.msk.msra.mxu1 %vm1489_vm1, %v1384_v39  ;;  %v193_v39 = vld [vmem:[%s3487_s0 + $0x568] sm:$0xff] }
  0xc6   :  { %1949 = vmatprep.subr.mxu1 %v1383_v42 }
  0xc7   :  { %966 = vmatmul.mubr.f32.gmra.mxu0 %v31_v43  ;;  %1903 = vmatmul.mubr.msk.f32.gmra.mxu1 %vm349_vm0, %v47_v44 }
  0xc8   :  { %970 = vmatprep.mubr.f32.mxu0 %v39_v45  ;;  %1905 = vmatprep.mubr.msk.f32.mxu1 %vm349_vm0, %v54_v46  ;;  %v1382_v45 = vld [vmem:[%s3489_s3 + $0x20] sm:$0xff] }
  0xc9   :  { %1950 = vmatpush3.msra.mxu1 %v1383_v42 }
  0xca   :  { %1951 = vmatprep.subr.mxu1 %v1382_v45 }
  0xcb   :  { %971 = vmatmul.mubr.f32.gmra.mxu0 %v38_v47  ;;  %1906 = vmatmul.mubr.msk.f32.gmra.mxu1 %vm349_vm0, %v61_v48  ;;  %v143_v47 = vld [vmem:[%s3487_s0 + $0x3d8] sm:$0xff] }
  0xcc   :  { %975 = vmatprep.mubr.f32.mxu0 %v46_v49  ;;  %1908 = vmatprep.mubr.msk.f32.mxu1 %vm349_vm0, %v68_v50  ;;  %v151_v50 = vld [vmem:[%s3487_s0 + $0x418] sm:$0xff] }
  0xcd   :  { %1952 = vmatpush3.msra.mxu1 %v1382_v45 }
  0xcf   :  { %976 = vmatmul.mubr.f32.gmra.mxu0 %v45_v51  ;;  %1909 = vmatmul.mubr.msk.f32.gmra.mxu1 %vm349_vm0, %v75_v52  ;;  %v1381_v51 = vld [vmem:[%s3489_s3 + $0x18] sm:$0xff] }
  0xd0   :  { %980 = vmatprep.mubr.f32.mxu0 %v53_v53  ;;  %1911 = vmatprep.mubr.msk.f32.mxu1 %vm349_vm0, %v82_v54 }
  0xd1   :  { %1953 = vmatprep.subr.mxu1 %v1381_v51 }
  0xd2   :  { %1954 = vmatpush3.msra.mxu1 %v1381_v51 }
  0xd3   :  { %981 = vmatmul.mubr.f32.gmra.mxu0 %v52_v55  ;;  %1912 = vmatmul.mubr.msk.f32.gmra.mxu1 %vm349_vm0, %v89_v56  ;;  %v1380_v55 = vld [vmem:[%s3489_s3 + $0x10] sm:$0xff] }
  0xd4   :  { %985 = vmatprep.mubr.f32.mxu0 %v60_v57  ;;  %1914 = vmatprep.mubr.msk.f32.mxu1 %vm349_vm0, %v96_v58  ;;  %v150_v57 = vld [vmem:[%s3487_s0 + $0x410] sm:$0xff] }
  0xd5   :  { %1955 = vmatprep.subr.mxu1 %v1380_v55 }
  0xd6   :  { %1956 = vmatpush3.msra.mxu1 %v1380_v55 }
  0xd7   :  { %986 = vmatmul.mubr.f32.gmra.mxu0 %v59_v59  ;;  %1915 = vmatmul.mubr.msk.f32.gmra.mxu1 %vm349_vm0, %v103_v60  ;;  %v158_v60 = vld [vmem:[%s3487_s0 + $0x450] sm:$0xff] }
  0xd8   :  { %990 = vmatprep.mubr.f32.mxu0 %v67_v61  ;;  %1917 = vmatprep.mubr.msk.f32.mxu1 %vm349_vm0, %v110_v62  ;;  %v1379_v61 = vld [vmem:[%s3489_s3 + $0x8] sm:$0xff] }
  0xd9   :  { %1957 = vmatprep.subr.mxu1 %v1379_v61 }
  0xda   :  { %1958 = vmatpush3.msra.mxu1 %v1379_v61  ;;  %v206_v61 = vld [vmem:[%s3487_s0 + $0x5d0] sm:$0xff] }
  0xdb   :  { %991 = vmatmul.mubr.f32.gmra.mxu0 %v66_v63  ;;  %1918 = vmatmul.mubr.msk.f32.gmra.mxu1 %vm349_vm0, %v117_v1 }
  0xdc   :  { %995 = vmatprep.mubr.f32.mxu0 %v74_v2  ;;  %1920 = vmatprep.mubr.msk.f32.mxu1 %vm349_vm0, %v124_v3  ;;  %v1378_v2 = vld [vmem:[%s3489_s3] sm:$0xff] }
  0xdd   :  { %1959 = vmatprep.subr.mxu1 %v1378_v2 }
  0xde   :  { %1960 = vmatpush3.msra.mxu1 %v1378_v2  ;;  %v214_v2 = vld [vmem:[%s3487_s0 + $0x610] sm:$0xff] }
  0xdf   :  { %996 = vmatmul.mubr.f32.gmra.mxu0 %v73_v4  ;;  %1921 = vmatmul.mubr.msk.f32.gmra.mxu1 %vm349_vm0, %v131_v5  ;;  %v157_v4 = vld [vmem:[%s3487_s0 + $0x448] sm:$0xff] }
  0xe0   :  { %1000 = vmatprep.mubr.f32.mxu0 %v81_v6  ;;  %1923 = vmatprep.mubr.msk.f32.mxu1 %vm349_vm0, %v138_v7  ;;  %v165_v7 = vld [vmem:[%s3487_s0 + $0x488] sm:$0xff] }
  0xe3   :  { %1001 = vmatmul.mubr.f32.gmra.mxu0 %v80_v8  ;;  %1924 = vmatmul.mubr.msk.f32.gmra.mxu1 %vm349_vm0, %v145_v9 }
  0xe4   :  { %1005 = vmatprep.mubr.f32.mxu0 %v88_v10  ;;  %1926 = vmatprep.mubr.msk.f32.mxu1 %vm349_vm0, %v152_v11 }
  0xe7   :  { %1006 = vmatmul.mubr.f32.gmra.mxu0 %v87_v12  ;;  %1927 = vmatmul.mubr.msk.f32.gmra.mxu1 %vm349_vm0, %v159_v13  ;;  %v164_v12 = vld [vmem:[%s3487_s0 + $0x480] sm:$0xff] }
  0xe8   :  { %1010 = vmatprep.mubr.f32.mxu0 %v95_v14  ;;  %1929 = vmatprep.mubr.msk.f32.mxu1 %vm349_vm0, %v166_v15  ;;  %v172_v15 = vld [vmem:[%s3487_s0 + $0x4c0] sm:$0xff] }
  0xeb   :  { %1011 = vmatmul.mubr.f32.gmra.mxu0 %v94_v16  ;;  %1930 = vmatmul.mubr.msk.f32.gmra.mxu1 %vm349_vm0, %v173_v17 }
  0xec   :  { %1015 = vmatprep.mubr.f32.mxu0 %v102_v18  ;;  %1932 = vmatprep.mubr.msk.f32.mxu1 %vm349_vm0, %v180_v19 }
  0xef   :  { %1016 = vmatmul.mubr.f32.gmra.mxu0 %v101_v20  ;;  %1933 = vmatmul.mubr.msk.f32.gmra.mxu1 %vm349_vm0, %v187_v21  ;;  %v171_v20 = vld [vmem:[%s3487_s0 + $0x4b8] sm:$0xff] }
  0xf0   :  { %1020 = vmatprep.mubr.f32.mxu0 %v109_v22  ;;  %1935 = vmatprep.mubr.msk.f32.mxu1 %vm349_vm0, %v194_v23  ;;  %v179_v23 = vld [vmem:[%s3487_s0 + $0x4f8] sm:$0xff] }
  0xf3   :  { %1021 = vmatmul.mubr.f32.gmra.mxu0 %v108_v24  ;;  %1936 = vmatmul.mubr.msk.f32.gmra.mxu1 %vm349_vm0, %v201_v25 }
  0xf4   :  { %1025 = vmatprep.mubr.f32.mxu0 %v116_v26  ;;  %1938 = vmatprep.mubr.msk.f32.mxu1 %vm349_vm0, %v208_v27 }
  0xf7   :  { %1026 = vmatmul.mubr.f32.gmra.mxu0 %v115_v28  ;;  %1939 = vmatmul.mubr.msk.f32.gmra.mxu1 %vm349_vm0, %v215_v29  ;;  %v178_v28 = vld [vmem:[%s3487_s0 + $0x4f0] sm:$0xff] }
  0xf8   :  { %1030 = vmatprep.mubr.f32.mxu0 %v123_v30  ;;  %1941 = vmatprep.mubr.msk.f32.mxu1 %vm349_vm0, %v222_v31  ;;  %v186_v31 = vld [vmem:[%s3487_s0 + $0x530] sm:$0xff] }
  0xfb   :  { %1031 = vmatmul.mubr.f32.gmra.mxu0 %v122_v32  ;;  %1942 = vmatmul.mubr.msk.f32.gmra.mxu1 %vm349_vm0, %v229_v33 }
  0xfc   :  { %1035 = vmatprep.mubr.f32.mxu0 %v130_v34  ;;  %1944 = vmatprep.mubr.msk.f32.mxu1 %vm349_vm0, %v236_v35 }
  0xff   :  { %1036 = vmatmul.mubr.f32.gmra.mxu0 %v129_v36  ;;  %1945 = vmatmul.mubr.msk.f32.gmra.mxu1 %vm349_vm0, %v243_v37  ;;  %v185_v36 = vld [vmem:[%s3487_s0 + $0x528] sm:$0xff] }
 0x100   :  { %1040 = vmatprep.mubr.f32.mxu0 %v137_v38 }
 0x102   :  { %v512_v43 = vpop.f32.mrf.mxu0 }
 0x103   :  { %v737_v44 = vpop.f32.mrf.mxu1  ;;  %1041 = vmatmul.mubr.f32.gmra.mxu0 %v136_v40  ;;  %v513_v46 = vadd.f32 %v3051_v0, %v512_v43 }
 0x104   :  { %1045 = vmatprep.mubr.f32.mxu0 %v144_v41  ;;  %v514_v48 = vpop.f32.mrf.mxu0 }
 0x105   :  { %v739_v49 = vpop.f32.mrf.mxu1  ;;  %v3072_v52 = vadd.f32 %v737_v44, %v513_v46  ;;  %v192_v44 = vld [vmem:[%s3487_s0 + $0x560] sm:$0xff] }
 0x106   :  { %v517_v53 = vpop.f32.mrf.mxu0 }
 0x107   :  { %v742_v54 = vpop.f32.mrf.mxu1  ;;  %1046 = vmatmul.mubr.f32.gmra.mxu0 %v143_v47  ;;  %v518_v56 = vadd.f32 %v3051_v0, %v517_v53  ;;  %v200_v47 = vld [vmem:[%s3487_s0 + $0x5a0] sm:$0xff]  ;;  %v199_v53 = vld [vmem:[%s3487_s0 + $0x598] sm:$0xff] }
 0x108   :  { %1050 = vmatprep.mubr.f32.mxu0 %v151_v50  ;;  %v519_v58 = vpop.f32.mrf.mxu0 }
 0x109   :  { %v744_v59 = vpop.f32.mrf.mxu1  ;;  %v3087_v62 = vadd.f32 %v742_v54, %v518_v56  ;;  %v207_v56 = vld [vmem:[%s3487_s0 + $0x5d8] sm:$0xff] }
 0x10b   :  { %v522_v63 = vpop.f32.mrf.mxu0  ;;  %v747_v1 = vpop.f32.mrf.mxu1  ;;  %1051 = vmatmul.mubr.f32.gmra.mxu0 %v150_v57 }
 0x10c   :  { %v523_v3 = vadd.f32 %v3051_v0, %v522_v63  ;;  %1055 = vmatprep.mubr.f32.mxu0 %v158_v60 }
 0x10d   :  { %v524_v5 = vpop.f32.mrf.mxu0  ;;  %v749_v6 = vpop.f32.mrf.mxu1 }
 0x10e   :  { %v3099_v8 = vadd.f32 %v747_v1, %v523_v3 }
 0x10f   :  { %v527_v9 = vpop.f32.mrf.mxu0  ;;  %v752_v10 = vpop.f32.mrf.mxu1  ;;  %1056 = vmatmul.mubr.f32.gmra.mxu0 %v157_v4 }
 0x110   :  { %v528_v11 = vadd.f32 %v3051_v0, %v527_v9  ;;  %1060 = vmatprep.mubr.f32.mxu0 %v165_v7  ;;  %v213_v7 = vld [vmem:[%s3487_s0 + $0x608] sm:$0xff] }
 0x111   :  { %v529_v13 = vpop.f32.mrf.mxu0  ;;  %v754_v14 = vpop.f32.mrf.mxu1 }
 0x112   :  { %v3108_v16 = vadd.f32 %v752_v10, %v528_v11  ;;  %v221_v11 = vld [vmem:[%s3487_s0 + $0x648] sm:$0xff] }
 0x113   :  { %v532_v17 = vpop.f32.mrf.mxu0  ;;  %v757_v18 = vpop.f32.mrf.mxu1  ;;  %1061 = vmatmul.mubr.f32.gmra.mxu0 %v164_v12 }
 0x114   :  { %v533_v19 = vadd.f32 %v3051_v0, %v532_v17  ;;  %1065 = vmatprep.mubr.f32.mxu0 %v172_v15  ;;  %v220_v17 = vld [vmem:[%s3487_s0 + $0x640] sm:$0xff] }
 0x115   :  { %v534_v21 = vpop.f32.mrf.mxu0  ;;  %v759_v22 = vpop.f32.mrf.mxu1 }
 0x116   :  { %v3117_v24 = vadd.f32 %v757_v18, %v533_v19 }
 0x117   :  { %v537_v25 = vpop.f32.mrf.mxu0  ;;  %v762_v26 = vpop.f32.mrf.mxu1  ;;  %1066 = vmatmul.mubr.f32.gmra.mxu0 %v171_v20  ;;  %v228_v20 = vld [vmem:[%s3487_s0 + $0x680] sm:$0xff] }
 0x118   :  { %v538_v27 = vadd.f32 %v3051_v0, %v537_v25  ;;  %1070 = vmatprep.mubr.f32.mxu0 %v179_v23 }
 0x119   :  { %v539_v29 = vpop.f32.mrf.mxu0  ;;  %v764_v30 = vpop.f32.mrf.mxu1 }
 0x11a   :  { %v3126_v32 = vadd.f32 %v762_v26, %v538_v27  ;;  %v227_v26 = vld [vmem:[%s3487_s0 + $0x678] sm:$0xff] }
 0x11b   :  { %v542_v33 = vpop.f32.mrf.mxu0  ;;  %v767_v34 = vpop.f32.mrf.mxu1  ;;  %1071 = vmatmul.mubr.f32.gmra.mxu0 %v178_v28  ;;  %v235_v29 = vld [vmem:[%s3487_s0 + $0x6b8] sm:$0xff] }
 0x11c   :  { %v543_v35 = vadd.f32 %v3051_v0, %v542_v33  ;;  %1075 = vmatprep.mubr.f32.mxu0 %v186_v31 }
 0x11d   :  { %v544_v37 = vpop.f32.mrf.mxu0  ;;  %v769_v38 = vpop.f32.mrf.mxu1 }
 0x11e   :  { %v3135_v40 = vadd.f32 %v767_v34, %v543_v35  ;;  %v234_v35 = vld [vmem:[%s3487_s0 + $0x6b0] sm:$0xff] }
 0x11f   :  { %v547_v41 = vpop.f32.mrf.mxu0  ;;  %v772_v42 = vpop.f32.mrf.mxu1  ;;  %1076 = vmatmul.mubr.f32.gmra.mxu0 %v185_v36  ;;  %v242_v38 = vld [vmem:[%s3487_s0 + $0x6f0] sm:$0xff] }
 0x120   :  { %v548_v43 = vadd.f32 %v3051_v0, %v547_v41  ;;  %1080 = vmatprep.mubr.f32.mxu0 %v193_v39 }
 0x121   :  { %v549_v45 = vpop.f32.mrf.mxu0  ;;  %v774_v46 = vpop.f32.mrf.mxu1 }
 0x122   :  { %v3144_v48 = vadd.f32 %v772_v42, %v548_v43 }
 0x123   :  { %v552_v49 = vpop.f32.mrf.mxu0  ;;  %v777_v50 = vpop.f32.mrf.mxu1  ;;  %1081 = vmatmul.mubr.f32.gmra.mxu0 %v192_v44  ;;  %v241_v44 = vld [vmem:[%s3487_s0 + $0x6e8] sm:$0xff] }
 0x124   :  { %v553_v51 = vadd.f32 %v3051_v0, %v552_v49  ;;  %1085 = vmatprep.mubr.f32.mxu0 %v200_v47 }
 0x125   :  { %v554_v54 = vpop.f32.mrf.mxu0  ;;  %v779_v55 = vpop.f32.mrf.mxu1 }
 0x126   :  { %v3153_v57 = vadd.f32 %v777_v50, %v553_v51 }
 0x127   :  { %v557_v58 = vpop.f32.mrf.mxu0  ;;  %v782_v59 = vpop.f32.mrf.mxu1  ;;  %1086 = vmatmul.mubr.f32.gmra.mxu0 %v199_v53 }
 0x128   :  { %v558_v60 = vadd.f32 %v3051_v0, %v557_v58  ;;  %1090 = vmatprep.mubr.f32.mxu0 %v207_v56 }
 0x129   :  { %v559_v63 = vpop.f32.mrf.mxu0  ;;  %v784_v1 = vpop.f32.mrf.mxu1 }
 0x12a   :  { %v3162_v3 = vadd.f32 %v782_v59, %v558_v60 }
 0x12b   :  { %v562_v4 = vpop.f32.mrf.mxu0  ;;  %v787_v5 = vpop.f32.mrf.mxu1  ;;  %1091 = vmatmul.mubr.f32.gmra.mxu0 %v206_v61 }
 0x12c   :  { %v563_v6 = vadd.f32 %v3051_v0, %v562_v4  ;;  %1095 = vmatprep.mubr.f32.mxu0 %v214_v2 }
 0x12d   :  { %v564_v9 = vpop.f32.mrf.mxu0  ;;  %v789_v10 = vpop.f32.mrf.mxu1 }
 0x12e   :  { %v3171_v12 = vadd.f32 %v787_v5, %v563_v6 }
 0x12f   :  { %v567_v13 = vpop.f32.mrf.mxu0  ;;  %v792_v14 = vpop.f32.mrf.mxu1  ;;  %1096 = vmatmul.mubr.f32.gmra.mxu0 %v213_v7 }
 0x130   :  { %v568_v15 = vadd.f32 %v3051_v0, %v567_v13  ;;  %1100 = vmatprep.mubr.f32.mxu0 %v221_v11 }
 0x131   :  { %v569_v18 = vpop.f32.mrf.mxu0  ;;  %v794_v19 = vpop.f32.mrf.mxu1 }
 0x132   :  { %v3180_v21 = vadd.f32 %v792_v14, %v568_v15 }
 0x133   :  { %v572_v22 = vpop.f32.mrf.mxu0  ;;  %v797_v23 = vpop.f32.mrf.mxu1  ;;  %1101 = vmatmul.mubr.f32.gmra.mxu0 %v220_v17 }
 0x134   :  { %v573_v25 = vadd.f32 %v3051_v0, %v572_v22  ;;  %1105 = vmatprep.mubr.f32.mxu0 %v228_v20 }
 0x135   :  { %v574_v27 = vpop.f32.mrf.mxu0  ;;  %v799_v28 = vpop.f32.mrf.mxu1 }
 0x136   :  { %v3189_v30 = vadd.f32 %v797_v23, %v573_v25 }
 0x137   :  { %v577_v31 = vpop.f32.mrf.mxu0  ;;  %v802_v33 = vpop.f32.mrf.mxu1  ;;  %1106 = vmatmul.mubr.f32.gmra.mxu0 %v227_v26 }
 0x138   :  { %v578_v34 = vadd.f32 %v3051_v0, %v577_v31  ;;  %1110 = vmatprep.mubr.f32.mxu0 %v235_v29 }
 0x139   :  { %v579_v36 = vpop.f32.mrf.mxu0  ;;  %v804_v37 = vpop.f32.mrf.mxu1 }
 0x13a   :  { %v3198_v39 = vadd.f32 %v802_v33, %v578_v34 }
 0x13b   :  { %v582_v41 = vpop.f32.mrf.mxu0  ;;  %v807_v42 = vpop.f32.mrf.mxu1  ;;  %1111 = vmatmul.mubr.f32.gmra.mxu0 %v234_v35 }
 0x13c   :  { %v583_v43 = vadd.f32 %v3051_v0, %v582_v41  ;;  %1115 = vmatprep.mubr.f32.mxu0 %v242_v38 }
 0x13d   :  { %v584_v45 = vpop.f32.mrf.mxu0  ;;  %v809_v46 = vpop.f32.mrf.mxu1 }
 0x13e   :  { %v3204_v47 = vadd.f32 %v807_v42, %v583_v43 }
 0x13f   :  { %v587_v49 = vpop.f32.mrf.mxu0  ;;  %v812_v50 = vpop.f32.mrf.mxu1  ;;  %1116 = vmatmul.mubr.f32.gmra.mxu0 %v241_v44 }
 0x140   :  { %v588_v51 = vadd.f32 %v3051_v0, %v587_v49 }
 0x141   :  { %v589_v53 = vpop.f32.mrf.mxu0  ;;  %v814_v54 = vpop.f32.mrf.mxu1 }
 0x142   :  { %v3207_v55 = vadd.f32 %v812_v50, %v588_v51 }
 0x143   :  { %v592_v56 = vpop.f32.mrf.mxu0  ;;  %v817_v58 = vpop.f32.mrf.mxu1 }
 0x144   :  { %v593_v59 = vadd.f32 %v3051_v0, %v592_v56 }
 0x145   :  { %v594_v60 = vpop.f32.mrf.mxu0  ;;  %v819_v61 = vpop.f32.mrf.mxu1 }
 0x146   :  { %v3210_v63 = vadd.f32 %v817_v58, %v593_v59 }
 0x147   :  { %v597_v1 = vpop.f32.mrf.mxu0  ;;  %v822_v2 = vpop.f32.mrf.mxu1 }
 0x148   :  { %v598_v4 = vadd.f32 %v3051_v0, %v597_v1 }
 0x149   :  { %v599_v5 = vpop.f32.mrf.mxu0  ;;  %v824_v6 = vpop.f32.mrf.mxu1 }
 0x14a   :  { %v3213_v7 = vadd.f32 %v822_v2, %v598_v4 }
 0x14b   :  { %v602_v9 = vpop.f32.mrf.mxu0  ;;  %v827_v10 = vpop.f32.mrf.mxu1 }
 0x14c   :  { %v603_v11 = vadd.f32 %v3051_v0, %v602_v9 }
 0x14d   :  { %v604_v13 = vpop.f32.mrf.mxu0  ;;  %v829_v14 = vpop.f32.mrf.mxu1 }
 0x14e   :  { %v3216_v15 = vadd.f32 %v827_v10, %v603_v11 }
 0x14f   :  { %v607_v17 = vpop.f32.mrf.mxu0  ;;  %v832_v18 = vpop.f32.mrf.mxu1 }
 0x150   :  { %v608_v19 = vadd.f32 %v3051_v0, %v607_v17 }
 0x151   :  { %v609_v20 = vpop.f32.mrf.mxu0  ;;  %v834_v22 = vpop.f32.mrf.mxu1 }
 0x152   :  { %v3219_v23 = vadd.f32 %v832_v18, %v608_v19 }
 0x153   :  { %v612_v25 = vpop.f32.mrf.mxu0  ;;  %v837_v26 = vpop.f32.mrf.mxu1 }
 0x154   :  { %v613_v27 = vadd.f32 %v3051_v0, %v612_v25 }
 0x155   :  { %v614_v28 = vpop.f32.mrf.mxu0  ;;  %v839_v29 = vpop.f32.mrf.mxu1 }
 0x156   :  { %v3222_v31 = vadd.f32 %v837_v26, %v613_v27 }
 0x157   :  { %v617_v33 = vpop.f32.mrf.mxu0  ;;  %v842_v34 = vpop.f32.mrf.mxu1 }
 0x158   :  { %v618_v35 = vadd.f32 %v3051_v0, %v617_v33 }
 0x159   :  { %v619_v36 = vpop.f32.mrf.mxu0  ;;  %v844_v37 = vpop.f32.mrf.mxu1 }
 0x15a   :  { %v3225_v38 = vadd.f32 %v842_v34, %v618_v35 }
 0x15b   :  { %v622_v41 = vpop.f32.mrf.mxu0  ;;  %v847_v42 = vpop.f32.mrf.mxu1 }
 0x15c   :  { %v623_v43 = vadd.f32 %v3051_v0, %v622_v41 }
 0x15d   :  { %v624_v44 = vpop.f32.mrf.mxu0  ;;  %v849_v45 = vpop.f32.mrf.mxu1 }
 0x15e   :  { %v3228_v46 = vadd.f32 %v847_v42, %v623_v43 }
 0x15f   :  { %v627_v49 = vpop.f32.mrf.mxu0  ;;  %v852_v50 = vpop.f32.mrf.mxu1 }
 0x160   :  { %v628_v51 = vadd.f32 %v3051_v0, %v627_v49 }
 0x161   :  { %v629_v53 = vpop.f32.mrf.mxu0  ;;  %v854_v54 = vpop.f32.mrf.mxu1 }
 0x162   :  { %v3231_v56 = vadd.f32 %v852_v50, %v628_v51 }
 0x163   :  { %v632_v58 = vpop.f32.mrf.mxu0  ;;  %v857_v59 = vpop.f32.mrf.mxu1 }
 0x164   :  { %v633_v60 = vadd.f32 %v3051_v0, %v632_v58 }
 0x165   :  { %v634_v61 = vpop.f32.mrf.mxu0  ;;  %v859_v1 = vpop.f32.mrf.mxu1 }
 0x166   :  { %v3234_v2 = vadd.f32 %v857_v59, %v633_v60 }
 0x167   :  { %v637_v4 = vpop.f32.mrf.mxu0  ;;  %v862_v5 = vpop.f32.mrf.mxu1 }
 0x168   :  { %v638_v6 = vadd.f32 %v3051_v0, %v637_v4 }
 0x169   :  { %v639_v9 = vpop.f32.mrf.mxu0  ;;  %v864_v10 = vpop.f32.mrf.mxu1 }
 0x16a   :  { %v3237_v11 = vadd.f32 %v862_v5, %v638_v6 }
 0x16b   :  { %v642_v13 = vpop.f32.mrf.mxu0  ;;  %v867_v14 = vpop.f32.mrf.mxu1 }
 0x16c   :  { %v643_v17 = vadd.f32 %v3051_v0, %v642_v13 }
 0x16d   :  { %v644_v18 = vpop.f32.mrf.mxu0  ;;  %v869_v19 = vpop.f32.mrf.mxu1 }
 0x16e   :  { %v3240_v20 = vadd.f32 %v867_v14, %v643_v17 }
 0x16f   :  { %v647_v22 = vpop.f32.mrf.mxu0  ;;  %v872_v25 = vpop.f32.mrf.mxu1 }
 0x170   :  { %v648_v26 = vadd.f32 %v3051_v0, %v647_v22 }
 0x171   :  { %v649_v27 = vpop.f32.mrf.mxu0  ;;  %v874_v28 = vpop.f32.mrf.mxu1 }
 0x172   :  { %v3243_v29 = vadd.f32 %v872_v25, %v648_v26 }
 0x173   :  { %v652_v33 = vpop.f32.mrf.mxu0  ;;  %v877_v34 = vpop.f32.mrf.mxu1 }
 0x174   :  { %v653_v35 = vadd.f32 %v3051_v0, %v652_v33 }
 0x175   :  { %v654_v36 = vpop.f32.mrf.mxu0  ;;  %v879_v37 = vpop.f32.mrf.mxu1 }
 0x176   :  { %v3246_v41 = vadd.f32 %v877_v34, %v653_v35 }
 0x177   :  { %v657_v42 = vpop.f32.mrf.mxu0  ;;  %v882_v43 = vpop.f32.mrf.mxu1 }
 0x178   :  { %v658_v44 = vadd.f32 %v3051_v0, %v657_v42 }
 0x179   :  { %v659_v45 = vpop.f32.mrf.mxu0  ;;  %v884_v49 = vpop.f32.mrf.mxu1 }
 0x17a   :  { %v3249_v50 = vadd.f32 %v882_v43, %v658_v44 }
 0x17b   :  { %v662_v51 = vpop.f32.mrf.mxu0  ;;  %v887_v53 = vpop.f32.mrf.mxu1 }
 0x17c   :  { %v663_v54 = vadd.f32 %v3051_v0, %v662_v51 }
 0x17d   :  { %v664_v58 = vpop.f32.mrf.mxu0  ;;  %v889_v59 = vpop.f32.mrf.mxu1 }
 0x17e   :  { %v3252_v60 = vadd.f32 %v887_v53, %v663_v54 }
 0x17f   :  { %v667_v61 = vpop.f32.mrf.mxu0  ;;  %v892_v1 = vpop.f32.mrf.mxu1 }
 0x180   :  { %v668_v4 = vadd.f32 %v3051_v0, %v667_v61 }
 0x181   :  { %v669_v5 = vpop.f32.mrf.mxu0  ;;  %v894_v6 = vpop.f32.mrf.mxu1 }
 0x182   :  { %v3255_v9 = vadd.f32 %v892_v1, %v668_v4 }
 0x183   :  { %v962_v10 = vpop.f32.mrf.mxu0  ;;  %v1901_v13 = vpop.f32.mrf.mxu1 }
 0x184   :  { %v963_v14 = vadd.f32 %v962_v10, %v3072_v52 }
 0x185   :  { %v964_v17 = vpop.f32.mrf.mxu0  ;;  %v1187_v18 = vpop.f32.mrf.mxu1 }
 0x186   :  { %v1188_v19 = vadd.f32 %v1187_v18, %v963_v14 }
 0x187   :  { %v967_v22 = vpop.f32.mrf.mxu0  ;;  %v1904_v25 = vpop.f32.mrf.mxu1 }
 0x188   :  { %v1346_v26 = vmax.f32 %v1188_v19, 0.0  ;;  %v968_v27 = vadd.f32 %v967_v22, %v3087_v62 }
 0x189   :  { %v969_v28 = vpop.f32.mrf.mxu0  ;;  %v1197_v34 = vpop.f32.mrf.mxu1 }
 0x18a   :  { %v1193_v33 = vadd.f32 %v1901_v13, %v968_v27  ;;  %1961 = vmatprep.mubr.msk.f32.mxu1 %vm1392_vm2, %v1346_v26 }
 0x18b   :  { %v972_v0 = vpop.f32.mrf.mxu0  ;;  %v1907_v43 = vpop.f32.mrf.mxu1 }
 0x18c   :  { %v1347_v35 = vmax.f32 %v1193_v33, 0.0  ;;  %v973_v36 = vadd.f32 %v972_v0, %v3099_v8 }
 0x18d   :  { %v974_v37 = vpop.f32.mrf.mxu0  ;;  %v1207_v53 = vpop.f32.mrf.mxu1 }
 0x18e   :  { %v1198_v52 = vadd.f32 %v1197_v34, %v973_v36  ;;  %1962 = vmatmul.mubr.msk.f32.vlgmr.msra.gmra.mxu1 %vm1392_vm2, %v1347_v35 }
 0x18f   :  { %v977_v42 = vpop.f32.mrf.mxu0  ;;  %v1910_v1 = vpop.f32.mrf.mxu1 }
 0x190   :  { %v1348_v44 = vmax.f32 %v1198_v52, 0.0  ;;  %v978_v45 = vadd.f32 %v977_v42, %v3108_v16 }
 0x191   :  { %v979_v49 = vpop.f32.mrf.mxu0  ;;  %v1217_v13 = vpop.f32.mrf.mxu1 }
 0x192   :  { %v1203_v62 = vadd.f32 %v1904_v25, %v978_v45  ;;  %1964 = vmatprep.mubr.msk.f32.mxu1 %vm1392_vm2, %v1348_v44 }
 0x193   :  { %v982_v51 = vpop.f32.mrf.mxu0  ;;  %v1913_v22 = vpop.f32.mrf.mxu1 }
 0x194   :  { %v1349_v54 = vmax.f32 %v1203_v62, 0.0  ;;  %v983_v58 = vadd.f32 %v982_v51, %v3117_v24 }
 0x195   :  { %v984_v59 = vpop.f32.mrf.mxu0  ;;  %v1227_v33 = vpop.f32.mrf.mxu1 }
 0x196   :  { %v1208_v8 = vadd.f32 %v1207_v53, %v983_v58  ;;  %1965 = vmatmul.mubr.msk.f32.gmra.mxu1 %vm1392_vm2, %v1349_v54 }
 0x197   :  { %v987_v61 = vpop.f32.mrf.mxu0  ;;  %v1916_v37 = vpop.f32.mrf.mxu1 }
 0x198   :  { %v1350_v4 = vmax.f32 %v1208_v8, 0.0  ;;  %v988_v5 = vadd.f32 %v987_v61, %v3126_v32 }
 0x199   :  { %v989_v6 = vpop.f32.mrf.mxu0  ;;  %v1237_v45 = vpop.f32.mrf.mxu1 }
 0x19a   :  { %v1213_v16 = vadd.f32 %v1907_v43, %v988_v5  ;;  %1967 = vmatprep.mubr.msk.f32.mxu1 %vm1392_vm2, %v1350_v4 }
 0x19b   :  { %v992_v10 = vpop.f32.mrf.mxu0  ;;  %v1919_v54 = vpop.f32.mrf.mxu1 }
 0x19c   :  { %v1351_v14 = vmax.f32 %v1213_v16, 0.0  ;;  %v993_v17 = vadd.f32 %v992_v10, %v3135_v40 }
 0x19d   :  { %v994_v18 = vpop.f32.mrf.mxu0 }
 0x19e   :  { %v1218_v24 = vadd.f32 %v1217_v13, %v993_v17  ;;  %1968 = vmatmul.mubr.msk.f32.gmra.mxu1 %vm1392_vm2, %v1351_v14 }
 0x19f   :  { %v997_v19 = vpop.f32.mrf.mxu0 }
 0x1a0   :  { %v1352_v25 = vmax.f32 %v1218_v24, 0.0  ;;  %v998_v26 = vadd.f32 %v997_v19, %v3144_v48 }
 0x1a1   :  { %v999_v27 = vpop.f32.mrf.mxu0 }
 0x1a2   :  { %v1223_v32 = vadd.f32 %v1910_v1, %v998_v26  ;;  %1970 = vmatprep.mubr.msk.f32.mxu1 %vm1392_vm2, %v1352_v25  ;;  %v1247_v1 = vpop.f32.mrf.mxu1 }
 0x1a3   :  { %v1002_v28 = vpop.f32.mrf.mxu0 }
 0x1a4   :  { %v1353_v0 = vmax.f32 %v1223_v32, 0.0  ;;  %v1003_v34 = vadd.f32 %v1002_v28, %v3153_v57  ;;  %v1922_v10 = vpop.f32.mrf.mxu1 }
 0x1a5   :  { %v1004_v35 = vpop.f32.mrf.mxu0 }
 0x1a6   :  { %v1228_v40 = vadd.f32 %v1227_v33, %v1003_v34  ;;  %1971 = vmatmul.mubr.msk.f32.gmra.mxu1 %vm1392_vm2, %v1353_v0  ;;  %v1257_v24 = vpop.f32.mrf.mxu1 }
 0x1a7   :  { %v1007_v36 = vpop.f32.mrf.mxu0 }
 0x1a8   :  { %v1354_v52 = vmax.f32 %v1228_v40, 0.0  ;;  %v1008_v42 = vadd.f32 %v1007_v36, %v3162_v3  ;;  %v1925_v27 = vpop.f32.mrf.mxu1 }
 0x1a9   :  { %v1009_v43 = vpop.f32.mrf.mxu0 }
 0x1aa   :  { %v1233_v48 = vadd.f32 %v1913_v22, %v1008_v42  ;;  %1973 = vmatprep.mubr.msk.f32.mxu1 %vm1392_vm2, %v1354_v52  ;;  %v1267_v34 = vpop.f32.mrf.mxu1 }
 0x1ab   :  { %v1012_v44 = vpop.f32.mrf.mxu0 }
 0x1ac   :  { %v1355_v49 = vmax.f32 %v1233_v48, 0.0  ;;  %v1013_v62 = vadd.f32 %v1012_v44, %v3171_v12  ;;  %v1928_v52 = vpop.f32.mrf.mxu1 }
 0x1ad   :  { %v1014_v51 = vpop.f32.mrf.mxu0 }
 0x1ae   :  { %v1238_v57 = vadd.f32 %v1237_v45, %v1013_v62  ;;  %1974 = vmatmul.mubr.msk.f32.gmra.mxu1 %vm1392_vm2, %v1355_v49  ;;  %v1277_v45 = vpop.f32.mrf.mxu1 }
 0x1af   :  { %v1017_v53 = vpop.f32.mrf.mxu0 }
 0x1b0   :  { %v1356_v58 = vmax.f32 %v1238_v57, 0.0  ;;  %v1018_v59 = vadd.f32 %v1017_v53, %v3180_v21  ;;  %v1931_v53 = vpop.f32.mrf.mxu1 }
 0x1b1   :  { %v1019_v8 = vpop.f32.mrf.mxu0 }
 0x1b2   :  { %v1243_v3 = vadd.f32 %v1916_v37, %v1018_v59  ;;  %1976 = vmatprep.mubr.msk.f32.mxu1 %vm1392_vm2, %v1356_v58 }
 0x1b3   :  { %v1022_v61 = vpop.f32.mrf.mxu0 }
 0x1b4   :  { %v1357_v4 = vmax.f32 %v1243_v3, 0.0  ;;  %v1023_v5 = vadd.f32 %v1022_v61, %v3189_v30  ;;  %v1287_v3 = vpop.f32.mrf.mxu1 }
 0x1b5   :  { %v1024_v6 = vpop.f32.mrf.mxu0 }
 0x1b6   :  { %v1248_v12 = vadd.f32 %v1247_v1, %v1023_v5  ;;  %1977 = vmatmul.mubr.msk.f32.gmra.mxu1 %vm1392_vm2, %v1357_v4  ;;  %v1934_v6 = vpop.f32.mrf.mxu1 }
 0x1b7   :  { %v1027_v16 = vpop.f32.mrf.mxu0 }
 0x1b8   :  { %v1358_v13 = vmax.f32 %v1248_v12, 0.0  ;;  %v1028_v14 = vadd.f32 %v1027_v16, %v3198_v39 }
 0x1b9   :  { %v1029_v17 = vpop.f32.mrf.mxu0 }
 0x1ba   :  { %v1253_v21 = vadd.f32 %v1919_v54, %v1028_v14  ;;  %1979 = vmatprep.mubr.msk.f32.mxu1 %vm1392_vm2, %v1358_v13  ;;  %v1297_v14 = vpop.f32.mrf.mxu1 }
 0x1bb   :  { %v1032_v18 = vpop.f32.mrf.mxu0 }
 0x1bc   :  { %v1359_v19 = vmax.f32 %v1253_v21, 0.0  ;;  %v1033_v22 = vadd.f32 %v1032_v18, %v3204_v47 }
 0x1bd   :  { %v1034_v25 = vpop.f32.mrf.mxu0 }
 0x1be   :  { %v1258_v30 = vadd.f32 %v1257_v24, %v1033_v22  ;;  %1980 = vmatmul.mubr.msk.f32.gmra.mxu1 %vm1392_vm2, %v1359_v19  ;;  %v1937_v19 = vpop.f32.mrf.mxu1 }
 0x1bf   :  { %v1037_v26 = vpop.f32.mrf.mxu0 }
 0x1c0   :  { %v1360_v32 = vmax.f32 %v1258_v30, 0.0  ;;  %v1038_v28 = vadd.f32 %v1037_v26, %v3207_v55 }
 0x1c1   :  { %v1039_v33 = vpop.f32.mrf.mxu0 }
 0x1c2   :  { %v1263_v39 = vadd.f32 %v1922_v10, %v1038_v28  ;;  %1982 = vmatprep.mubr.msk.f32.mxu1 %vm1392_vm2, %v1360_v32 }
 0x1c3   :  { %v1042_v0 = vpop.f32.mrf.mxu0 }
 0x1c4   :  { %v1361_v35 = vmax.f32 %v1263_v39, 0.0  ;;  %v1043_v40 = vadd.f32 %v1042_v0, %v3210_v63 }
 0x1c5   :  { %v1044_v36 = vpop.f32.mrf.mxu0 }
 0x1c6   :  { %v1268_v47 = vadd.f32 %v1267_v34, %v1043_v40  ;;  %1983 = vmatmul.mubr.msk.f32.gmra.mxu1 %vm1392_vm2, %v1361_v35 }
 0x1c7   :  { %v1047_v37 = vpop.f32.mrf.mxu0 }
 0x1c8   :  { %v1362_v42 = vmax.f32 %v1268_v47, 0.0  ;;  %v1048_v43 = vadd.f32 %v1047_v37, %v3213_v7 }
 0x1c9   :  { %v1049_v48 = vpop.f32.mrf.mxu0 }
 0x1ca   :  { %v1273_v55 = vadd.f32 %v1925_v27, %v1048_v43  ;;  %1985 = vmatprep.mubr.msk.f32.mxu1 %vm1392_vm2, %v1362_v42  ;;  %v1307_v27 = vpop.f32.mrf.mxu1 }
 0x1cb   :  { %v1052_v44 = vpop.f32.mrf.mxu0 }
 0x1cc   :  { %v1363_v49 = vmax.f32 %v1273_v55, 0.0  ;;  %v1053_v62 = vadd.f32 %v1052_v44, %v3216_v15  ;;  %v1940_v0 = vpop.f32.mrf.mxu1 }
 0x1cd   :  { %v1054_v51 = vpop.f32.mrf.mxu0 }
 0x1ce   :  { %v1278_v63 = vadd.f32 %v1277_v45, %v1053_v62  ;;  %1986 = vmatmul.mubr.msk.f32.gmra.mxu1 %vm1392_vm2, %v1363_v49  ;;  %v1317_v47 = vpop.f32.mrf.mxu1 }
 0x1cf   :  { %v1057_v57 = vpop.f32.mrf.mxu0 }
 0x1d0   :  { %v1364_v54 = vmax.f32 %v1278_v63, 0.0  ;;  %v1058_v58 = vadd.f32 %v1057_v57, %v3219_v23  ;;  %v1943_v48 = vpop.f32.mrf.mxu1 }
 0x1d1   :  { %v1059_v59 = vpop.f32.mrf.mxu0 }
 0x1d2   :  { %v1283_v7 = vadd.f32 %v1928_v52, %v1058_v58  ;;  %1988 = vmatprep.mubr.msk.f32.mxu1 %vm1392_vm2, %v1364_v54  ;;  %v1327_v62 = vpop.f32.mrf.mxu1 }
 0x1d3   :  { %v1062_v8 = vpop.f32.mrf.mxu0 }
 0x1d4   :  { %v1365_v61 = vmax.f32 %v1283_v7, 0.0  ;;  %v1063_v1 = vadd.f32 %v1062_v8, %v3222_v31  ;;  %v1946_v54 = vpop.f32.mrf.mxu1 }
 0x1d5   :  { %v1064_v4 = vpop.f32.mrf.mxu0 }
 0x1d6   :  { %v1288_v15 = vadd.f32 %v1287_v3, %v1063_v1  ;;  %1989 = vmatmul.mubr.msk.f32.gmra.mxu1 %vm1392_vm2, %v1365_v61  ;;  %v1337_v3 = vpop.f32.mrf.mxu1 }
 0x1d7   :  { %v1067_v5 = vpop.f32.mrf.mxu0 }
 0x1d8   :  { %v1366_v12 = vmax.f32 %v1288_v15, 0.0  ;;  %v1068_v16 = vadd.f32 %v1067_v5, %v3225_v38 }
 0x1d9   :  { %v1069_v10 = vpop.f32.mrf.mxu0 }
 0x1da   :  { %v1293_v23 = vadd.f32 %v1931_v53, %v1068_v16  ;;  %1991 = vmatprep.mubr.msk.f32.mxu1 %vm1392_vm2, %v1366_v12  ;;  %v3324_v10 = vld [vmem:[%s3490_s4] ss:$0 sm:$0xff] }
 0x1db   :  { %v1072_v13 = vpop.f32.mrf.mxu0 }
 0x1dc   :  { %v1367_v17 = vmax.f32 %v1293_v23, 0.0  ;;  %v1073_v21 = vadd.f32 %v1072_v13, %v3228_v46 }
 0x1dd   :  { %v1074_v18 = vpop.f32.mrf.mxu0 }
 0x1de   :  { %v1298_v31 = vadd.f32 %v1297_v14, %v1073_v21  ;;  %1992 = vmatmul.mubr.msk.f32.gmra.mxu1 %vm1392_vm2, %v1367_v17 }
 0x1df   :  { %v1077_v24 = vpop.f32.mrf.mxu0 }
 0x1e0   :  { %v1368_v22 = vmax.f32 %v1298_v31, 0.0  ;;  %v1078_v25 = vadd.f32 %v1077_v24, %v3231_v56 }
 0x1e1   :  { %v1079_v30 = vpop.f32.mrf.mxu0 }
 0x1e2   :  { %v1303_v38 = vadd.f32 %v1934_v6, %v1078_v25  ;;  %1994 = vmatprep.mubr.msk.f32.mxu1 %vm1392_vm2, %v1368_v22 }
 0x1e3   :  { %v1082_v26 = vpop.f32.mrf.mxu0 }
 0x1e4   :  { %v1369_v32 = vmax.f32 %v1303_v38, 0.0  ;;  %v1083_v28 = vadd.f32 %v1082_v26, %v3234_v2 }
 0x1e5   :  { %v1084_v33 = vpop.f32.mrf.mxu0 }
 0x1e6   :  { %v1308_v46 = vadd.f32 %v1307_v27, %v1083_v28  ;;  %1995 = vmatmul.mubr.msk.f32.gmra.mxu1 %vm1392_vm2, %v1369_v32 }
 0x1e7   :  { %v1087_v39 = vpop.f32.mrf.mxu0 }
 0x1e8   :  { %v1370_v34 = vmax.f32 %v1308_v46, 0.0  ;;  %v1088_v35 = vadd.f32 %v1087_v39, %v3237_v11 }
 0x1e9   :  { %v1089_v40 = vpop.f32.mrf.mxu0 }
 0x1ea   :  { %v1313_v56 = vadd.f32 %v1937_v19, %v1088_v35  ;;  %1997 = vmatprep.mubr.msk.f32.mxu1 %vm1392_vm2, %v1370_v34 }
 0x1eb   :  { %v1092_v36 = vpop.f32.mrf.mxu0 }
 0x1ec   :  { %v1371_v37 = vmax.f32 %v1313_v56, 0.0  ;;  %v1093_v52 = vadd.f32 %v1092_v36, %v3240_v20 }
 0x1ed   :  { %v1094_v42 = vpop.f32.mrf.mxu0 }
 0x1ee   :  { %v1318_v2 = vadd.f32 %v1317_v47, %v1093_v52  ;;  %1998 = vmatmul.mubr.msk.f32.gmra.mxu1 %vm1392_vm2, %v1371_v37 }
 0x1ef   :  { %v1097_v43 = vpop.f32.mrf.mxu0 }
 0x1f0   :  { %v1372_v55 = vmax.f32 %v1318_v2, 0.0  ;;  %v1098_v44 = vadd.f32 %v1097_v43, %v3243_v29 }
 0x1f1   :  { %v1099_v45 = vpop.f32.mrf.mxu0 }
 0x1f2   :  { %v1323_v11 = vadd.f32 %v1940_v0, %v1098_v44  ;;  %2000 = vmatprep.mubr.msk.f32.mxu1 %vm1392_vm2, %v1372_v55 }
 0x1f3   :  { %v1102_v49 = vpop.f32.mrf.mxu0 }
 0x1f4   :  { %v1373_v51 = vmax.f32 %v1323_v11, 0.0  ;;  %v1103_v63 = vadd.f32 %v1102_v49, %v3246_v41 }
 0x1f5   :  { %v1104_v57 = vpop.f32.mrf.mxu0 }
 0x1f6   :  { %v1328_v20 = vadd.f32 %v1327_v62, %v1103_v63  ;;  %2001 = vmatmul.mubr.msk.f32.gmra.mxu1 %vm1392_vm2, %v1373_v51 }
 0x1f7   :  { %v1107_v53 = vpop.f32.mrf.mxu0 }
 0x1f8   :  { %v1374_v58 = vmax.f32 %v1328_v20, 0.0  ;;  %v1108_v59 = vadd.f32 %v1107_v53, %v3249_v50 }
 0x1f9   :  { %v1109_v7 = vpop.f32.mrf.mxu0 }
 0x1fa   :  { %v1333_v29 = vadd.f32 %v1943_v48, %v1108_v59  ;;  %2003 = vmatprep.mubr.msk.f32.mxu1 %vm1392_vm2, %v1374_v58 }
 0x1fb   :  { %v1112_v8 = vpop.f32.mrf.mxu0 }
 0x1fc   :  { %v1375_v61 = vmax.f32 %v1333_v29, 0.0  ;;  %v1113_v1 = vadd.f32 %v1112_v8, %v3252_v60 }
 0x1fd   :  { %v1114_v4 = vpop.f32.mrf.mxu0 }
 0x1fe   :  { %v1338_v41 = vadd.f32 %v1337_v3, %v1113_v1  ;;  %2004 = vmatmul.mubr.msk.f32.gmra.mxu1 %vm1392_vm2, %v1375_v61 }
 0x1ff   :  { %v1117_v15 = vpop.f32.mrf.mxu0 }
 0x200   :  { %v1376_v5 = vmax.f32 %v1338_v41, 0.0  ;;  %v1118_v6 = vadd.f32 %v1117_v15, %v3255_v9 }
 0x201   :  { %v1119_v12 = vpop.f32.mrf.mxu0 }
 0x202   :  { %v1343_v16 = vadd.f32 %v1946_v54, %v1118_v6  ;;  %2006 = vmatprep.mubr.msk.f32.mxu1 %vm1392_vm2, %v1376_v5 }
 0x204   :  { %v1377_v50 = vmax.f32 %v1343_v16, 0.0 }
 0x206   :  { %2007 = vmatmul.mubr.msk.f32.gmra.mxu1 %vm1392_vm2, %v1377_v50 }
 0x24e   :  { %v1963_v60 = vpop.f32.mrf.mxu1 }
 0x24f   :  { %v1565_v23 = vadd.f32 %v1963_v60, %v3324_v10 }
 0x250   :  { %v1559_v13 = vpop.f32.mrf.mxu1 }
 0x251   :  { %1720 = vst.msk [vmem:[%s3491_s5 + $0x8] sm:$0xff] %vm1718_vm3, %v1565_v23  ;;  %v1560_v9 = vadd.f32 %v3324_v10, %v1559_v13 }
 0x253   :  { %1719 = vst.msk [vmem:[%s3491_s5] sm:$0xff] %vm1718_vm3, %v1560_v9 }
 0x256   :  { %v1966_v14 = vpop.f32.mrf.mxu1 }
 0x257   :  { %v1575_v17 = vadd.f32 %v1966_v14, %v3324_v10 }
 0x258   :  { %v1569_v21 = vpop.f32.mrf.mxu1 }
 0x259   :  { %1722 = vst.msk [vmem:[%s3491_s5 + $0x18] sm:$0xff] %vm1718_vm3, %v1575_v17  ;;  %v1570_v18 = vadd.f32 %v3324_v10, %v1569_v21 }
 0x25b   :  { %1721 = vst.msk [vmem:[%s3491_s5 + $0x10] sm:$0xff] %vm1718_vm3, %v1570_v18 }
 0x25e   :  { %v1969_v31 = vpop.f32.mrf.mxu1 }
 0x25f   :  { %v1585_v24 = vadd.f32 %v1969_v31, %v3324_v10 }
 0x260   :  { %v1579_v19 = vpop.f32.mrf.mxu1 }
 0x261   :  { %1724 = vst.msk [vmem:[%s3491_s5 + $0x28] sm:$0xff] %vm1718_vm3, %v1585_v24  ;;  %v1580_v22 = vadd.f32 %v3324_v10, %v1579_v19 }
 0x263   :  { %1723 = vst.msk [vmem:[%s3491_s5 + $0x20] sm:$0xff] %vm1718_vm3, %v1580_v22 }
 0x266   :  { %v1972_v25 = vpop.f32.mrf.mxu1 }
 0x267   :  { %v1595_v30 = vadd.f32 %v1972_v25, %v3324_v10 }
 0x268   :  { %v1589_v38 = vpop.f32.mrf.mxu1 }
 0x269   :  { %1726 = vst.msk [vmem:[%s3491_s5 + $0x38] sm:$0xff] %vm1718_vm3, %v1595_v30  ;;  %v1590_v26 = vadd.f32 %v3324_v10, %v1589_v38 }
 0x26b   :  { %1725 = vst.msk [vmem:[%s3491_s5 + $0x30] sm:$0xff] %vm1718_vm3, %v1590_v26 }
 0x26e   :  { %v1975_v27 = vpop.f32.mrf.mxu1 }
 0x26f   :  { %v1605_v32 = vadd.f32 %v1975_v27, %v3324_v10 }
 0x270   :  { %v1599_v28 = vpop.f32.mrf.mxu1 }
 0x271   :  { %1728 = vst.msk [vmem:[%s3491_s5 + $0x48] sm:$0xff] %vm1718_vm3, %v1605_v32  ;;  %v1600_v33 = vadd.f32 %v3324_v10, %v1599_v28 }
 0x273   :  { %1727 = vst.msk [vmem:[%s3491_s5 + $0x40] sm:$0xff] %vm1718_vm3, %v1600_v33 }
 0x276   :  { %v1978_v46 = vpop.f32.mrf.mxu1 }
 0x277   :  { %v1615_v39 = vadd.f32 %v1978_v46, %v3324_v10 }
 0x278   :  { %v1609_v0 = vpop.f32.mrf.mxu1 }
 0x279   :  { %1730 = vst.msk [vmem:[%s3491_s5 + $0x58] sm:$0xff] %vm1718_vm3, %v1615_v39  ;;  %v1610_v34 = vadd.f32 %v3324_v10, %v1609_v0 }
 0x27b   :  { %1729 = vst.msk [vmem:[%s3491_s5 + $0x50] sm:$0xff] %vm1718_vm3, %v1610_v34 }
 0x27e   :  { %v1981_v35 = vpop.f32.mrf.mxu1 }
 0x27f   :  { %v1625_v40 = vadd.f32 %v1981_v35, %v3324_v10 }
 0x280   :  { %v1619_v56 = vpop.f32.mrf.mxu1 }
 0x281   :  { %1732 = vst.msk [vmem:[%s3491_s5 + $0x68] sm:$0xff] %vm1718_vm3, %v1625_v40  ;;  %v1620_v36 = vadd.f32 %v3324_v10, %v1619_v56 }
 0x283   :  { %1731 = vst.msk [vmem:[%s3491_s5 + $0x60] sm:$0xff] %vm1718_vm3, %v1620_v36 }
 0x286   :  { %v1984_v47 = vpop.f32.mrf.mxu1 }
 0x287   :  { %v1635_v37 = vadd.f32 %v1984_v47, %v3324_v10 }
 0x288   :  { %v1629_v52 = vpop.f32.mrf.mxu1 }
 0x289   :  { %1734 = vst.msk [vmem:[%s3491_s5 + $0x78] sm:$0xff] %vm1718_vm3, %v1635_v37  ;;  %v1630_v42 = vadd.f32 %v3324_v10, %v1629_v52 }
 0x28b   :  { %1733 = vst.msk [vmem:[%s3491_s5 + $0x70] sm:$0xff] %vm1718_vm3, %v1630_v42 }
 0x28e   :  { %v1987_v2 = vpop.f32.mrf.mxu1 }
 0x28f   :  { %v1645_v43 = vadd.f32 %v1987_v2, %v3324_v10 }
 0x290   :  { %v1639_v48 = vpop.f32.mrf.mxu1 }
 0x291   :  { %1736 = vst.msk [vmem:[%s3491_s5 + $0x88] sm:$0xff] %vm1718_vm3, %v1645_v43  ;;  %v1640_v55 = vadd.f32 %v3324_v10, %v1639_v48 }
 0x293   :  { %1735 = vst.msk [vmem:[%s3491_s5 + $0x80] sm:$0xff] %vm1718_vm3, %v1640_v55 }
 0x296   :  { %v1990_v44 = vpop.f32.mrf.mxu1 }
 0x297   :  { %v1655_v45 = vadd.f32 %v1990_v44, %v3324_v10 }
 0x298   :  { %v1649_v11 = vpop.f32.mrf.mxu1 }
 0x299   :  { %1738 = vst.msk [vmem:[%s3491_s5 + $0x98] sm:$0xff] %vm1718_vm3, %v1655_v45  ;;  %v1650_v49 = vadd.f32 %v3324_v10, %v1649_v11 }
 0x29b   :  { %1737 = vst.msk [vmem:[%s3491_s5 + $0x90] sm:$0xff] %vm1718_vm3, %v1650_v49 }
 0x29e   :  { %v1993_v62 = vpop.f32.mrf.mxu1 }
 0x29f   :  { %v1665_v51 = vadd.f32 %v1993_v62, %v3324_v10 }
 0x2a0   :  { %v1659_v63 = vpop.f32.mrf.mxu1 }
 0x2a1   :  { %1740 = vst.msk [vmem:[%s3491_s5 + $0xa8] sm:$0xff] %vm1718_vm3, %v1665_v51  ;;  %v1660_v57 = vadd.f32 %v3324_v10, %v1659_v63 }
 0x2a3   :  { %1739 = vst.msk [vmem:[%s3491_s5 + $0xa0] sm:$0xff] %vm1718_vm3, %v1660_v57 }
 0x2a6   :  { %v1996_v20 = vpop.f32.mrf.mxu1 }
 0x2a7   :  { %v1675_v53 = vadd.f32 %v1996_v20, %v3324_v10 }
 0x2a8   :  { %v1669_v54 = vpop.f32.mrf.mxu1 }
 0x2a9   :  { %1742 = vst.msk [vmem:[%s3491_s5 + $0xb8] sm:$0xff] %vm1718_vm3, %v1675_v53  ;;  %v1670_v58 = vadd.f32 %v3324_v10, %v1669_v54 }
 0x2ab   :  { %1741 = vst.msk [vmem:[%s3491_s5 + $0xb0] sm:$0xff] %vm1718_vm3, %v1670_v58 }
 0x2ae   :  { %v1999_v59 = vpop.f32.mrf.mxu1 }
 0x2af   :  { %v1685_v7 = vadd.f32 %v1999_v59, %v3324_v10 }
 0x2b0   :  { %v1679_v29 = vpop.f32.mrf.mxu1 }
 0x2b1   :  { %1744 = vst.msk [vmem:[%s3491_s5 + $0xc8] sm:$0xff] %vm1718_vm3, %v1685_v7  ;;  %v1680_v8 = vadd.f32 %v3324_v10, %v1679_v29 }
 0x2b3   :  { %1743 = vst.msk [vmem:[%s3491_s5 + $0xc0] sm:$0xff] %vm1718_vm3, %v1680_v8 }
 0x2b6   :  { %v2002_v3 = vpop.f32.mrf.mxu1 }
 0x2b7   :  { %v1695_v61 = vadd.f32 %v2002_v3, %v3324_v10 }
 0x2b8   :  { %v1689_v1 = vpop.f32.mrf.mxu1 }
 0x2b9   :  { %1746 = vst.msk [vmem:[%s3491_s5 + $0xd8] sm:$0xff] %vm1718_vm3, %v1695_v61  ;;  %v1690_v4 = vadd.f32 %v3324_v10, %v1689_v1 }
 0x2bb   :  { %1745 = vst.msk [vmem:[%s3491_s5 + $0xd0] sm:$0xff] %vm1718_vm3, %v1690_v4 }
 0x2be   :  { %v2005_v41 = vpop.f32.mrf.mxu1 }
 0x2bf   :  { %v1705_v15 = vadd.f32 %v2005_v41, %v3324_v10 }
 0x2c0   :  { %v1699_v5 = vpop.f32.mrf.mxu1 }
 0x2c1   :  { %1748 = vst.msk [vmem:[%s3491_s5 + $0xe8] sm:$0xff] %vm1718_vm3, %v1705_v15  ;;  %v1700_v6 = vadd.f32 %v3324_v10, %v1699_v5 }
 0x2c3   :  { %1747 = vst.msk [vmem:[%s3491_s5 + $0xe0] sm:$0xff] %vm1718_vm3, %v1700_v6 }
 0x2c6   :  { %v2008_v12 = vpop.f32.mrf.mxu1 }
 0x2c7   :  { %v1715_v16 = vadd.f32 %v2008_v12, %v3324_v10 }
 0x2c8   :  { %v1709_v50 = vpop.f32.mrf.mxu1 }
 0x2c9   :  { %1750 = vst.msk [vmem:[%s3491_s5 + $0xf8] sm:$0xff] %vm1718_vm3, %v1715_v16  ;;  %v1710_v60 = vadd.f32 %v3324_v10, %v1709_v50 }
 0x2cb   :  { %1749 = vst.msk [vmem:[%s3491_s5 + $0xf0] sm:$0xff] %vm1718_vm3, %v1710_v60 }

</bundles_post_ra>
